<compile_context>
chip_gen: v5e
topology: v5e:2x2
jax: 0.10.0
libtpu: 0.0.40
codegen_flags: <defaults>
</compile_context>

<pallas_src>
import functools

import jax
import jax.numpy as jnp
from jax.experimental import pallas as pl
from jax.experimental.pallas import tpu as pltpu


_MIB = 1024 * 1024


def _vmem_limit(resident_bytes, tile_bytes):
    """Scoped-VMEM request: resident arrays + double-buffered tiles + margin.

    Clamped to [32 MiB, 64 MiB] so the value is legal on every TPU generation
    (v7x physical VMEM is 64 MiB; 32 MiB is the default scoped limit).
    """
    est = int(1.25 * (resident_bytes + 2 * tile_bytes)) + _MIB
    return int(min(max(est, 32 * _MIB), 64 * _MIB))


# ---------------------------------------------------------------------------
# Kernel A: feature projection + fused per-head attention scores
# ---------------------------------------------------------------------------
def _proj_kernel(x_ref, w_ref, a_ref, feat_ref, scores_ref):
    """feat = x @ W ; scores = feat @ A  (A = block-diag of attn_l / attn_r)."""
    x = x_ref[...].astype(jnp.bfloat16)                       # cast at MXU boundary
    feat_f32 = jnp.dot(x, w_ref[...], preferred_element_type=jnp.float32)
    feat_bf = feat_f32.astype(jnp.bfloat16)
    feat_ref[...] = feat_bf                                   # (T, H*Fo) bf16
    scores_ref[...] = jnp.dot(feat_bf, a_ref[...],
                              preferred_element_type=jnp.float32)  # (T, 2H) f32


# ---------------------------------------------------------------------------
# Kernel B: softmax attention + aggregation + residual + bias + activation
# ---------------------------------------------------------------------------
def _attn_kernel(H, Fo, use_elu, has_res, *refs):
    """One destination-row tile of a GAT layer.

    refs = adj, feat, el_t, er, [x, res_W], bias, out, acc_scratch
      adj   : (T, N)  bf16 mask, adj[dst, src]
      feat  : (N, H*Fo) bf16 projected source features (resident)
      el_t  : (H, N)  f32 source attention scores, pre-transposed (resident)
      er    : (T, H)  f32 destination attention scores for this tile
      x     : (T, Fin) f32 raw features of dst rows (residual only)
      res_W : (Fin, H*Fo) bf16 residual projection
      bias  : (1, H*Fo) f32
      out   : (T, H*Fo) f32
      acc   : (T, H*Fo) f32 VMEM scratch (only used when H > 1)
    """
    if has_res:
        adj_ref, feat_ref, elt_ref, er_ref, x_ref, rw_ref, b_ref, o_ref, acc_ref = refs
    else:
        adj_ref, feat_ref, elt_ref, er_ref, b_ref, o_ref, acc_ref = refs

    adj = adj_ref[...].astype(jnp.float32)                    # (T, N) {0, 1}
    feat = feat_ref[...]                                      # (N, H*Fo) bf16

    def one_head(h, feat_h):
        el = elt_ref[h:h + 1, :]                              # (1, N) src score
        er = er_ref[:, h:h + 1]                               # (T, 1) dst score
        # e[dst, src] = leaky_relu(el[src] + er[dst]), slope 0.2 (DGL default)
        e = er + el                                           # (T, N) f32
        e = jnp.where(e > 0, e, 0.2 * e)
        # numerically-stable softmax over sources; apply the adjacency as a
        # multiply after exp (no -1e30 select).  The clamp below makes
        # zero-in-degree rows output 0 (matches DGL) instead of NaN.
        m = jnp.max(e, axis=-1, keepdims=True)
        p = jnp.exp(e - m) * adj                              # (T, N) f32
        s = jnp.maximum(jnp.sum(p, axis=-1, keepdims=True), 1e-20)
        # aggregate first (bf16 MXU), normalize after with an EUP reciprocal
        agg = jnp.dot(p.astype(jnp.bfloat16), feat_h,
                      preferred_element_type=jnp.float32)     # (T, Fo)
        return agg * pl.reciprocal(s, approx=True)

    if H == 1:
        # single head: keep the result in registers, skip the scratch staging
        out = one_head(0, feat)
    else:
        for h in range(H):                                    # few heads -> static unroll
            acc_ref[:, h * Fo:(h + 1) * Fo] = one_head(h, feat[:, h * Fo:(h + 1) * Fo])
        out = acc_ref[...]                                    # (T, H*Fo) f32

    if has_res:
        # residual branch: Linear(Fin -> H*Fo, bias=False) since Fin != H*Fo
        # TODO(synk): identity-residual case (Fin == H*Fo) not needed for this config
        out = out + jnp.dot(x_ref[...].astype(jnp.bfloat16), rw_ref[...],
                            preferred_element_type=jnp.float32)

    out = out + b_ref[...]                                    # bias, broadcast over nodes
    if use_elu:
        out = jnp.where(out > 0, out, jnp.exp(jnp.minimum(out, 0.0)) - 1.0)
    o_ref[...] = out.astype(o_ref.dtype)                      # single lane-dense store


# ---------------------------------------------------------------------------
# Host-side helpers
# ---------------------------------------------------------------------------
def _build_attn_matrix(attn_l, attn_r):
    """Block-diagonal (H*Fo, 2H): cols [0:H] give el per head, [H:2H] give er."""
    H, Fo = attn_l.shape
    eye = jnp.eye(H, dtype=attn_l.dtype)
    Al = (attn_l[:, :, None] * eye[:, None, :]).reshape(H * Fo, H)
    Ar = (attn_r[:, :, None] * eye[:, None, :]).reshape(H * Fo, H)
    return jnp.concatenate([Al, Ar], axis=1)


def _pick_tile(n, target):
    """Largest multiple of 8 that divides n and is <= target (fallback: n)."""
    if n % 8 != 0:
        return n
    best, t = 8, 8
    while t <= min(n, target):
        if n % t == 0:
            best = t
        t += 8
    return best


def gat_layer(x, adj, W, attn_l, attn_r, bias, res_W=None, use_elu=False,
              t_rows=256, t_dst=256):
    """One GATConv layer (heads concatenated along the feature axis)."""
    N, Fin = x.shape
    H, Fo = attn_l.shape
    HFo = H * Fo
    has_res = res_W is not None

    # Host-side prep (plain XLA): narrow dtypes for MXU/DMA, fused attn matrix.
    w_bf = W.astype(jnp.bfloat16)
    a_bf = _build_attn_matrix(attn_l, attn_r).astype(jnp.bfloat16)   # (HFo, 2H)
    adj_bf = adj.astype(jnp.bfloat16)
    bias2d = bias.reshape(1, HFo).astype(jnp.float32)
    rw_bf = res_W.astype(jnp.bfloat16) if has_res else None

    tr = _pick_tile(N, t_rows)
    td = _pick_tile(N, t_dst)

    # ---- Kernel A: projection + fused attention scores ----------------------
    vmem_a = _vmem_limit(
        resident_bytes=Fin * HFo * 2 + HFo * 2 * H * 2,
        tile_bytes=tr * Fin * 4 + tr * HFo * 2 + tr * 2 * H * 4)
    feat, scores = pl.pallas_call(
        _proj_kernel,
        grid_spec=pltpu.PrefetchScalarGridSpec(
            num_scalar_prefetch=0,
            grid=(N // tr,),
            in_specs=[
                pl.BlockSpec((tr, Fin), lambda i: (i, 0)),
                pl.BlockSpec((Fin, HFo), lambda i: (0, 0)),
                pl.BlockSpec((HFo, 2 * H), lambda i: (0, 0)),
            ],
            out_specs=[
                pl.BlockSpec((tr, HFo), lambda i: (i, 0)),
                pl.BlockSpec((tr, 2 * H), lambda i: (i, 0)),
            ],
        ),
        out_shape=(
            jax.ShapeDtypeStruct((N, HFo), jnp.bfloat16),
            jax.ShapeDtypeStruct((N, 2 * H), jnp.float32),
        ),
        compiler_params=pltpu.CompilerParams(
            dimension_semantics=("parallel",),
            vmem_limit_bytes=vmem_a),
        cost_estimate=pl.CostEstimate(
            flops=int(2 * N * Fin * HFo + 2 * N * HFo * 2 * H),
            transcendentals=0,
            bytes_accessed=int(N * Fin * 4 + Fin * HFo * 2 + HFo * 2 * H * 2
                               + N * HFo * 2 + N * 2 * H * 4),
        ),
    )(x, w_bf, a_bf)

    # One XLA transpose per layer (instead of one XLU transpose per dst tile).
    el_t = jnp.transpose(scores[:, :H])        # (H, N) source scores
    er = scores[:, H:]                         # (N, H) destination scores

    # ---- Kernel B: attention softmax + aggregation + residual + bias + act --
    kernel = functools.partial(_attn_kernel, H, Fo, use_elu, has_res)
    args = [adj_bf, feat, el_t, er]
    in_specs = [
        pl.BlockSpec((td, N), lambda i: (i, 0)),       # adj rows of dst tile
        pl.BlockSpec((N, HFo), lambda i: (0, 0)),      # feat (all sources), resident
        pl.BlockSpec((H, N), lambda i: (0, 0)),        # el^T (all sources), resident
        pl.BlockSpec((td, H), lambda i: (i, 0)),       # er for dst tile
    ]
    res_tile_bytes = 0
    res_resident_bytes = 0
    if has_res:
        args += [x, rw_bf]
        in_specs += [
            pl.BlockSpec((td, Fin), lambda i: (i, 0)),
            pl.BlockSpec((Fin, HFo), lambda i: (0, 0)),
        ]
        res_tile_bytes = td * Fin * 4
        res_resident_bytes = Fin * HFo * 2
    args.append(bias2d)
    in_specs.append(pl.BlockSpec((1, HFo), lambda i: (0, 0)))

    vmem_b = _vmem_limit(
        resident_bytes=(N * HFo * 2 + H * N * 4 + HFo * 4
                        + td * HFo * 4 + res_resident_bytes),
        tile_bytes=td * N * 2 + td * H * 4 + td * HFo * 4 + res_tile_bytes)

    out = pl.pallas_call(
        kernel,
        grid_spec=pltpu.PrefetchScalarGridSpec(
            num_scalar_prefetch=0,
            grid=(N // td,),
            in_specs=in_specs,
            out_specs=pl.BlockSpec((td, HFo), lambda i: (i, 0)),
            scratch_shapes=[pltpu.VMEM((td, HFo), jnp.float32)],
        ),
        out_shape=jax.ShapeDtypeStruct((N, HFo), jnp.float32),
        compiler_params=pltpu.CompilerParams(
            dimension_semantics=("parallel",),
            vmem_limit_bytes=vmem_b),
        cost_estimate=pl.CostEstimate(
            flops=int(2 * N * N * HFo + 6 * H * N * N
                      + (2 * N * Fin * HFo if has_res else 0)),
            transcendentals=int(H * N * N),
            bytes_accessed=int(N * N * 2 + N * HFo * 2 + N * 2 * H * 4
                               + N * HFo * 4 + (N * Fin * 4 if has_res else 0)),
        ),
    )(*args)
    return out


def gnn_gat_forward(adj, features, params, t_rows=256, t_dst=256):
    """GNNModelDGL.forward for name='gat'."""
    # l1: 8 heads of size hidden_dim//8, ELU, no residual; .flatten(1)
    h = gat_layer(features, adj,
                  params["W1"], params["al1"], params["ar1"], params["b1"],
                  res_W=None, use_elu=True, t_rows=t_rows, t_dst=t_dst)
    # l2: 1 head of size out_dim, linear residual, no activation; .mean(1) (1 head -> identity)
    logits = gat_layer(h, adj,
                       params["W2"], params["al2"], params["ar2"], params["b2"],
                       res_W=params["Wres2"], use_elu=False,
                       t_rows=t_rows, t_dst=t_dst)
    return logits


def init_params(key, in_dim, hidden_dim, out_dim):
    """Deterministic synthetic parameters matching GATConv shapes."""
    n_heads1, fo1 = 8, hidden_dim // 8
    n_heads2, fo2 = 1, out_dim
    ks = jax.random.split(key, 9)

    def xavier(k, shape):
        fan_in, fan_out = shape[0], shape[-1]
        scale = jnp.sqrt(2.0 / (fan_in + fan_out)).astype(jnp.float32)
        return scale * jax.random.normal(k, shape, dtype=jnp.float32)

    return {
        # layer 1: GATConv(in_dim, hidden_dim//8, 8 heads)
        "W1":  xavier(ks[0], (in_dim, n_heads1 * fo1)),
        "al1": 0.1 * jax.random.normal(ks[1], (n_heads1, fo1), dtype=jnp.float32),
        "ar1": 0.1 * jax.random.normal(ks[2], (n_heads1, fo1), dtype=jnp.float32),
        "b1":  jnp.zeros((n_heads1 * fo1,), dtype=jnp.float32),
        # layer 2: GATConv(hidden_dim, out_dim, 1 head, residual=True)
        "W2":  xavier(ks[3], (hidden_dim, n_heads2 * fo2)),
        "al2": 0.1 * jax.random.normal(ks[4], (n_heads2, fo2), dtype=jnp.float32),
        "ar2": 0.1 * jax.random.normal(ks[5], (n_heads2, fo2), dtype=jnp.float32),
        "b2":  jnp.zeros((n_heads2 * fo2,), dtype=jnp.float32),
        "Wres2": xavier(ks[6], (hidden_dim, n_heads2 * fo2)),
    }


def make_adjacency(n):
    """Small deterministic graph: ring (both directions) + self loops."""
    idx = jnp.arange(n)
    adj = jnp.zeros((n, n), dtype=jnp.float32)
    adj = adj.at[idx, idx].set(1.0)                     # self loops
    adj = adj.at[idx, (idx + 1) % n].set(1.0)           # edge (i+1) -> i
    adj = adj.at[idx, (idx - 1) % n].set(1.0)           # edge (i-1) -> i
    return adj  # adj[dst, src]


if __name__ == "__main__":
    # small shapes: N=16 nodes, in_dim=32, hidden_dim=32 (8 heads x 4), out_dim=8
    N, IN_DIM, HIDDEN_DIM, OUT_DIM = 16, 32, 32, 8

    key = jax.random.PRNGKey(0)
    k_feat, k_params = jax.random.split(key)
    features = jax.random.normal(k_feat, (N, IN_DIM), dtype=jnp.float32)
    adj = make_adjacency(N)
    params = init_params(k_params, IN_DIM, HIDDEN_DIM, OUT_DIM)

    # small dst/row tiles so the multi-tile (grid > 1) path is exercised
    fwd = jax.jit(functools.partial(gnn_gat_forward, t_rows=8, t_dst=8))
    logits = fwd(adj, features, params)
    logits = jax.block_until_ready(logits)
    assert logits.shape == (N, OUT_DIM), logits.shape
    assert bool(jnp.all(jnp.isfinite(logits)))
    print("KERNEL_OK")
</pallas_src>

<mosaic_0001>
module attributes {stable_mosaic.version = 11 : i64} {
  func.func @_proj_kernel(%arg0: i32, %arg1: memref<8x32xf32, #tpu.memory_space<vmem>>, %arg2: memref<32x32xbf16, #tpu.memory_space<vmem>>, %arg3: memref<32x16xbf16, #tpu.memory_space<vmem>>, %arg4: memref<8x32xbf16, #tpu.memory_space<vmem>>, %arg5: memref<8x16xf32, #tpu.memory_space<vmem>>) attributes {dimension_semantics = [#tpu.dimension_semantics<parallel>], iteration_bounds = array<i64: 2>, scalar_prefetch = 0 : i64, scratch_operands = 0 : i64, tpu.core_type = #tpu.core_type<tc>, window_params = [{transform_indices = @transform_0, window_bounds = array<i64: 8, 32>}, {pipeline_mode = #tpu.pipeline_mode<synchronous>, transform_indices = @transform_1, window_bounds = array<i64: 32, 32>}, {pipeline_mode = #tpu.pipeline_mode<synchronous>, transform_indices = @transform_2, window_bounds = array<i64: 32, 16>}, {transform_indices = @transform_3, window_bounds = array<i64: 8, 32>}, {transform_indices = @transform_4, window_bounds = array<i64: 8, 16>}]} {
    %c0 = arith.constant 0 : index
    %c0_0 = arith.constant 0 : index
    %0 = vector.load %arg1[%c0, %c0_0] : memref<8x32xf32, #tpu.memory_space<vmem>>, vector<8x32xf32>
    %1 = arith.truncf %0 : vector<8x32xf32> to vector<8x32xbf16>
    %c0_1 = arith.constant 0 : index
    %c0_2 = arith.constant 0 : index
    %2 = vector.load %arg2[%c0_1, %c0_2] : memref<32x32xbf16, #tpu.memory_space<vmem>>, vector<32x32xbf16>
    %cst = arith.constant dense<0.000000e+00> : vector<8x32xf32>
    %3 = tpu.matmul %1, %2, %cst {dimension_numbers = #tpu.dot_dimension_numbers<[1], [0], [0], [1], [0, 0, 1, 1], [], []>} : vector<8x32xbf16>, vector<32x32xbf16>, vector<8x32xf32> -> vector<8x32xf32>
    %4 = arith.truncf %3 : vector<8x32xf32> to vector<8x32xbf16>
    %c0_3 = arith.constant 0 : index
    %c0_4 = arith.constant 0 : index
    %5 = vector.load %arg4[%c0_3, %c0_4] : memref<8x32xbf16, #tpu.memory_space<vmem>>, vector<8x32xbf16>
    tpu.vector_store %arg4[%c0_3, %c0_4], %4 {strides = array<i32>} : memref<8x32xbf16, #tpu.memory_space<vmem>>, vector<8x32xbf16>,
    %c0_5 = arith.constant 0 : index
    %c0_6 = arith.constant 0 : index
    %6 = vector.load %arg3[%c0_5, %c0_6] : memref<32x16xbf16, #tpu.memory_space<vmem>>, vector<32x16xbf16>
    %cst_7 = arith.constant dense<0.000000e+00> : vector<8x16xf32>
    %7 = tpu.matmul %4, %6, %cst_7 {dimension_numbers = #tpu.dot_dimension_numbers<[1], [0], [0], [1], [0, 0, 1, 1], [], []>} : vector<8x32xbf16>, vector<32x16xbf16>, vector<8x16xf32> -> vector<8x16xf32>
    %c0_8 = arith.constant 0 : index
    %c0_9 = arith.constant 0 : index
    %8 = vector.load %arg5[%c0_8, %c0_9] : memref<8x16xf32, #tpu.memory_space<vmem>>, vector<8x16xf32>
    tpu.vector_store %arg5[%c0_8, %c0_9], %7 {strides = array<i32>} : memref<8x16xf32, #tpu.memory_space<vmem>>, vector<8x16xf32>,
    return
  }
  func.func @transform_0(%arg0: i32) -> (i32, i32) {
    %c0_i32 = arith.constant 0 : i32
    %c0_i32_0 = arith.constant 0 : i32
    return %arg0, %c0_i32 : i32, i32
  }
  func.func @transform_1(%arg0: i32) -> (i32, i32) {
    %c0_i32 = arith.constant 0 : i32
    %c0_i32_0 = arith.constant 0 : i32
    %c0_i32_1 = arith.constant 0 : i32
    return %c0_i32, %c0_i32_0 : i32, i32
  }
  func.func @transform_2(%arg0: i32) -> (i32, i32) {
    %c0_i32 = arith.constant 0 : i32
    %c0_i32_0 = arith.constant 0 : i32
    %c0_i32_1 = arith.constant 0 : i32
    return %c0_i32, %c0_i32_0 : i32, i32
  }
  func.func @transform_3(%arg0: i32) -> (i32, i32) {
    %c0_i32 = arith.constant 0 : i32
    %c0_i32_0 = arith.constant 0 : i32
    return %arg0, %c0_i32 : i32, i32
  }
  func.func @transform_4(%arg0: i32) -> (i32, i32) {
    %c0_i32 = arith.constant 0 : i32
    %c0_i32_0 = arith.constant 0 : i32
    return %arg0, %c0_i32 : i32, i32
  }
}

module attributes {stable_mosaic.version = 11 : i64} {
  func.func @_proj_kernel(%arg0: i32, %arg1: memref<8x32xf32, #tpu.memory_space<vmem>>, %arg2: memref<32x8xbf16, #tpu.memory_space<vmem>>, %arg3: memref<8x2xbf16, #tpu.memory_space<vmem>>, %arg4: memref<8x8xbf16, #tpu.memory_space<vmem>>, %arg5: memref<8x2xf32, #tpu.memory_space<vmem>>) attributes {dimension_semantics = [#tpu.dimension_semantics<parallel>], iteration_bounds = array<i64: 2>, scalar_prefetch = 0 : i64, scratch_operands = 0 : i64, tpu.core_type = #tpu.core_type<tc>, window_params = [{transform_indices = @transform_0, window_bounds = array<i64: 8, 32>}, {pipeline_mode = #tpu.pipeline_mode<synchronous>, transform_indices = @transform_1, window_bounds = array<i64: 32, 8>}, {pipeline_mode = #tpu.pipeline_mode<synchronous>, transform_indices = @transform_2, window_bounds = array<i64: 8, 2>}, {transform_indices = @transform_3, window_bounds = array<i64: 8, 8>}, {transform_indices = @transform_4, window_bounds = array<i64: 8, 2>}]} {
    %c0 = arith.constant 0 : index
    %c0_0 = arith.constant 0 : index
    %0 = vector.load %arg1[%c0, %c0_0] : memref<8x32xf32, #tpu.memory_space<vmem>>, vector<8x32xf32>
    %1 = arith.truncf %0 : vector<8x32xf32> to vector<8x32xbf16>
    %c0_1 = arith.constant 0 : index
    %c0_2 = arith.constant 0 : index
    %2 = vector.load %arg2[%c0_1, %c0_2] : memref<32x8xbf16, #tpu.memory_space<vmem>>, vector<32x8xbf16>
    %cst = arith.constant dense<0.000000e+00> : vector<8x8xf32>
    %3 = tpu.matmul %1, %2, %cst {dimension_numbers = #tpu.dot_dimension_numbers<[1], [0], [0], [1], [0, 0, 1, 1], [], []>} : vector<8x32xbf16>, vector<32x8xbf16>, vector<8x8xf32> -> vector<8x8xf32>
    %4 = arith.truncf %3 : vector<8x8xf32> to vector<8x8xbf16>
    %c0_3 = arith.constant 0 : index
    %c0_4 = arith.constant 0 : index
    %5 = vector.load %arg4[%c0_3, %c0_4] : memref<8x8xbf16, #tpu.memory_space<vmem>>, vector<8x8xbf16>
    tpu.vector_store %arg4[%c0_3, %c0_4], %4 {strides = array<i32>} : memref<8x8xbf16, #tpu.memory_space<vmem>>, vector<8x8xbf16>,
    %c0_5 = arith.constant 0 : index
    %c0_6 = arith.constant 0 : index
    %6 = vector.load %arg3[%c0_5, %c0_6] : memref<8x2xbf16, #tpu.memory_space<vmem>>, vector<8x2xbf16>
    %cst_7 = arith.constant dense<0.000000e+00> : vector<8x2xf32>
    %7 = tpu.matmul %4, %6, %cst_7 {dimension_numbers = #tpu.dot_dimension_numbers<[1], [0], [0], [1], [0, 0, 1, 1], [], []>} : vector<8x8xbf16>, vector<8x2xbf16>, vector<8x2xf32> -> vector<8x2xf32>
    %c0_8 = arith.constant 0 : index
    %c0_9 = arith.constant 0 : index
    %8 = vector.load %arg5[%c0_8, %c0_9] : memref<8x2xf32, #tpu.memory_space<vmem>>, vector<8x2xf32>
    tpu.vector_store %arg5[%c0_8, %c0_9], %7 {strides = array<i32>} : memref<8x2xf32, #tpu.memory_space<vmem>>, vector<8x2xf32>,
    return
  }
  func.func @transform_0(%arg0: i32) -> (i32, i32) {
    %c0_i32 = arith.constant 0 : i32
    %c0_i32_0 = arith.constant 0 : i32
    return %arg0, %c0_i32 : i32, i32
  }
  func.func @transform_1(%arg0: i32) -> (i32, i32) {
    %c0_i32 = arith.constant 0 : i32
    %c0_i32_0 = arith.constant 0 : i32
    %c0_i32_1 = arith.constant 0 : i32
    return %c0_i32, %c0_i32_0 : i32, i32
  }
  func.func @transform_2(%arg0: i32) -> (i32, i32) {
    %c0_i32 = arith.constant 0 : i32
    %c0_i32_0 = arith.constant 0 : i32
    %c0_i32_1 = arith.constant 0 : i32
    return %c0_i32, %c0_i32_0 : i32, i32
  }
  func.func @transform_3(%arg0: i32) -> (i32, i32) {
    %c0_i32 = arith.constant 0 : i32
    %c0_i32_0 = arith.constant 0 : i32
    return %arg0, %c0_i32 : i32, i32
  }
  func.func @transform_4(%arg0: i32) -> (i32, i32) {
    %c0_i32 = arith.constant 0 : i32
    %c0_i32_0 = arith.constant 0 : i32
    return %arg0, %c0_i32 : i32, i32
  }
}

module attributes {stable_mosaic.version = 11 : i64} {
  func.func @_attn_kernel(%arg0: i32, %arg1: memref<8x16xbf16, #tpu.memory_space<vmem>>, %arg2: memref<16x32xbf16, #tpu.memory_space<vmem>>, %arg3: memref<8x16xf32, #tpu.memory_space<vmem>>, %arg4: memref<8x8xf32, #tpu.memory_space<vmem>>, %arg5: memref<1x32xf32, #tpu.memory_space<vmem>>, %arg6: memref<8x32xf32, #tpu.memory_space<vmem>>, %arg7: memref<8x32xf32, #tpu.memory_space<vmem>>) attributes {dimension_semantics = [#tpu.dimension_semantics<parallel>], iteration_bounds = array<i64: 2>, scalar_prefetch = 0 : i64, scratch_operands = 1 : i64, tpu.core_type = #tpu.core_type<tc>, window_params = [{transform_indices = @transform_0, window_bounds = array<i64: 8, 16>}, {pipeline_mode = #tpu.pipeline_mode<synchronous>, transform_indices = @transform_1, window_bounds = array<i64: 16, 32>}, {pipeline_mode = #tpu.pipeline_mode<synchronous>, transform_indices = @transform_2, window_bounds = array<i64: 8, 16>}, {transform_indices = @transform_3, window_bounds = array<i64: 8, 8>}, {pipeline_mode = #tpu.pipeline_mode<synchronous>, transform_indices = @transform_4, window_bounds = array<i64: 1, 32>}, {transform_indices = @transform_5, window_bounds = array<i64: 8, 32>}]} {
    %c0 = arith.constant 0 : index
    %c0_0 = arith.constant 0 : index
    %0 = vector.load %arg1[%c0, %c0_0] : memref<8x16xbf16, #tpu.memory_space<vmem>>, vector<8x16xbf16>
    %1 = arith.extf %0 : vector<8x16xbf16> to vector<8x16xf32>
    %c0_1 = arith.constant 0 : index
    %c0_2 = arith.constant 0 : index
    %2 = vector.load %arg2[%c0_1, %c0_2] : memref<16x32xbf16, #tpu.memory_space<vmem>>, vector<16x32xbf16>
    %3 = vector.extract_strided_slice %2 {offsets = [0, 0], sizes = [16, 4], strides = [1, 1]} : vector<16x32xbf16> to vector<16x4xbf16>
    %c0_3 = arith.constant 0 : index
    %c0_4 = arith.constant 0 : index
    %4 = vector.load %arg3[%c0_3, %c0_4] : memref<8x16xf32, #tpu.memory_space<vmem>>, vector<1x16xf32>
    %c0_5 = arith.constant 0 : index
    %c0_6 = arith.constant 0 : index
    %5 = vector.load %arg4[%c0_5, %c0_6] : memref<8x8xf32, #tpu.memory_space<vmem>>, vector<8x1xf32>
    %6 = vector.broadcast %5 : vector<8x1xf32> to vector<8x16xf32>
    %7 = vector.broadcast %4 : vector<1x16xf32> to vector<8x16xf32>
    %8 = arith.addf %6, %7 : vector<8x16xf32>
    %cst = arith.constant 0.000000e+00 : f32
    %9 = vector.broadcast %cst : f32 to vector<8x16xf32>
    %10 = arith.cmpf ogt, %8, %9 : vector<8x16xf32>
    %cst_7 = arith.constant 2.000000e-01 : f32
    %11 = vector.broadcast %cst_7 : f32 to vector<8x16xf32>
    %12 = arith.mulf %11, %8 : vector<8x16xf32>
    %13 = arith.select %10, %8, %12 : vector<8x16xi1>, vector<8x16xf32>
    %cst_8 = arith.constant dense<0xFF800000> : vector<8xf32>
    %14 = vector.multi_reduction <maximumf>, %13, %cst_8 [1] : vector<8x16xf32> to vector<8xf32>
    %15 = vector.shape_cast %14 : vector<8xf32> to vector<8x1xf32>
    %16 = vector.broadcast %15 : vector<8x1xf32> to vector<8x16xf32>
    %17 = arith.subf %13, %16 : vector<8x16xf32>
    %18 = math.exp %17 : vector<8x16xf32>
    %19 = arith.mulf %18, %1 : vector<8x16xf32>
    %cst_9 = arith.constant dense<0.000000e+00> : vector<8xf32>
    %20 = vector.multi_reduction <add>, %19, %cst_9 [1] : vector<8x16xf32> to vector<8xf32>
    %21 = vector.shape_cast %20 : vector<8xf32> to vector<8x1xf32>
    %cst_10 = arith.constant 9.99999968E-21 : f32
    %22 = vector.broadcast %cst_10 : f32 to vector<8x1xf32>
    %23 = arith.maximumf %21, %22 : vector<8x1xf32>
    %24 = arith.truncf %19 : vector<8x16xf32> to vector<8x16xbf16>
    %cst_11 = arith.constant dense<0.000000e+00> : vector<8x4xf32>
    %25 = tpu.matmul %24, %3, %cst_11 {dimension_numbers = #tpu.dot_dimension_numbers<[1], [0], [0], [1], [0, 0, 1, 1], [], []>} : vector<8x16xbf16>, vector<16x4xbf16>, vector<8x4xf32> -> vector<8x4xf32>
    %26 = tpu.reciprocal %23 {approx = true} : vector<8x1xf32> -> vector<8x1xf32>
    %27 = vector.broadcast %26 : vector<8x1xf32> to vector<8x4xf32>
    %28 = arith.mulf %25, %27 : vector<8x4xf32>
    %c0_12 = arith.constant 0 : index
    %c0_13 = arith.constant 0 : index
    %29 = vector.load %arg7[%c0_12, %c0_13] : memref<8x32xf32, #tpu.memory_space<vmem>>, vector<8x4xf32>
    tpu.vector_store %arg7[%c0_12, %c0_13], %28 {strides = array<i32>} : memref<8x32xf32, #tpu.memory_space<vmem>>, vector<8x4xf32>,
    %30 = vector.extract_strided_slice %2 {offsets = [0, 4], sizes = [16, 4], strides = [1, 1]} : vector<16x32xbf16> to vector<16x4xbf16>
    %c1 = arith.constant 1 : index
    %c0_14 = arith.constant 0 : index
    %31 = vector.load %arg3[%c1, %c0_14] : memref<8x16xf32, #tpu.memory_space<vmem>>, vector<1x16xf32>
    %c0_15 = arith.constant 0 : index
    %c1_16 = arith.constant 1 : index
    %32 = vector.load %arg4[%c0_15, %c1_16] : memref<8x8xf32, #tpu.memory_space<vmem>>, vector<8x1xf32>
    %33 = vector.broadcast %32 : vector<8x1xf32> to vector<8x16xf32>
    %34 = vector.broadcast %31 : vector<1x16xf32> to vector<8x16xf32>
    %35 = arith.addf %33, %34 : vector<8x16xf32>
    %cst_17 = arith.constant 0.000000e+00 : f32
    %36 = vector.broadcast %cst_17 : f32 to vector<8x16xf32>
    %37 = arith.cmpf ogt, %35, %36 : vector<8x16xf32>
    %cst_18 = arith.constant 2.000000e-01 : f32
    %38 = vector.broadcast %cst_18 : f32 to vector<8x16xf32>
    %39 = arith.mulf %38, %35 : vector<8x16xf32>
    %40 = arith.select %37, %35, %39 : vector<8x16xi1>, vector<8x16xf32>
    %cst_19 = arith.constant dense<0xFF800000> : vector<8xf32>
    %41 = vector.multi_reduction <maximumf>, %40, %cst_19 [1] : vector<8x16xf32> to vector<8xf32>
    %42 = vector.shape_cast %41 : vector<8xf32> to vector<8x1xf32>
    %43 = vector.broadcast %42 : vector<8x1xf32> to vector<8x16xf32>
    %44 = arith.subf %40, %43 : vector<8x16xf32>
    %45 = math.exp %44 : vector<8x16xf32>
    %46 = arith.mulf %45, %1 : vector<8x16xf32>
    %cst_20 = arith.constant dense<0.000000e+00> : vector<8xf32>
    %47 = vector.multi_reduction <add>, %46, %cst_20 [1] : vector<8x16xf32> to vector<8xf32>
    %48 = vector.shape_cast %47 : vector<8xf32> to vector<8x1xf32>
    %cst_21 = arith.constant 9.99999968E-21 : f32
    %49 = vector.broadcast %cst_21 : f32 to vector<8x1xf32>
    %50 = arith.maximumf %48, %49 : vector<8x1xf32>
    %51 = arith.truncf %46 : vector<8x16xf32> to vector<8x16xbf16>
    %cst_22 = arith.constant dense<0.000000e+00> : vector<8x4xf32>
    %52 = tpu.matmul %51, %30, %cst_22 {dimension_numbers = #tpu.dot_dimension_numbers<[1], [0], [0], [1], [0, 0, 1, 1], [], []>} : vector<8x16xbf16>, vector<16x4xbf16>, vector<8x4xf32> -> vector<8x4xf32>
    %53 = tpu.reciprocal %50 {approx = true} : vector<8x1xf32> -> vector<8x1xf32>
    %54 = vector.broadcast %53 : vector<8x1xf32> to vector<8x4xf32>
    %55 = arith.mulf %52, %54 : vector<8x4xf32>
    %c0_23 = arith.constant 0 : index
    %c4 = arith.constant 4 : index
    %56 = vector.load %arg7[%c0_23, %c4] : memref<8x32xf32, #tpu.memory_space<vmem>>, vector<8x4xf32>
    tpu.vector_store %arg7[%c0_23, %c4], %55 {strides = array<i32>} : memref<8x32xf32, #tpu.memory_space<vmem>>, vector<8x4xf32>,
    %57 = vector.extract_strided_slice %2 {offsets = [0, 8], sizes = [16, 4], strides = [1, 1]} : vector<16x32xbf16> to vector<16x4xbf16>
    %c2 = arith.constant 2 : index
    %c0_24 = arith.constant 0 : index
    %58 = vector.load %arg3[%c2, %c0_24] : memref<8x16xf32, #tpu.memory_space<vmem>>, vector<1x16xf32>
    %c0_25 = arith.constant 0 : index
    %c2_26 = arith.constant 2 : index
    %59 = vector.load %arg4[%c0_25, %c2_26] : memref<8x8xf32, #tpu.memory_space<vmem>>, vector<8x1xf32>
    %60 = vector.broadcast %59 : vector<8x1xf32> to vector<8x16xf32>
    %61 = vector.broadcast %58 : vector<1x16xf32> to vector<8x16xf32>
    %62 = arith.addf %60, %61 : vector<8x16xf32>
    %cst_27 = arith.constant 0.000000e+00 : f32
    %63 = vector.broadcast %cst_27 : f32 to vector<8x16xf32>
    %64 = arith.cmpf ogt, %62, %63 : vector<8x16xf32>
    %cst_28 = arith.constant 2.000000e-01 : f32
    %65 = vector.broadcast %cst_28 : f32 to vector<8x16xf32>
    %66 = arith.mulf %65, %62 : vector<8x16xf32>
    %67 = arith.select %64, %62, %66 : vector<8x16xi1>, vector<8x16xf32>
    %cst_29 = arith.constant dense<0xFF800000> : vector<8xf32>
    %68 = vector.multi_reduction <maximumf>, %67, %cst_29 [1] : vector<8x16xf32> to vector<8xf32>
    %69 = vector.shape_cast %68 : vector<8xf32> to vector<8x1xf32>
    %70 = vector.broadcast %69 : vector<8x1xf32> to vector<8x16xf32>
    %71 = arith.subf %67, %70 : vector<8x16xf32>
    %72 = math.exp %71 : vector<8x16xf32>
    %73 = arith.mulf %72, %1 : vector<8x16xf32>
    %cst_30 = arith.constant dense<0.000000e+00> : vector<8xf32>
    %74 = vector.multi_reduction <add>, %73, %cst_30 [1] : vector<8x16xf32> to vector<8xf32>
    %75 = vector.shape_cast %74 : vector<8xf32> to vector<8x1xf32>
    %cst_31 = arith.constant 9.99999968E-21 : f32
    %76 = vector.broadcast %cst_31 : f32 to vector<8x1xf32>
    %77 = arith.maximumf %75, %76 : vector<8x1xf32>
    %78 = arith.truncf %73 : vector<8x16xf32> to vector<8x16xbf16>
    %cst_32 = arith.constant dense<0.000000e+00> : vector<8x4xf32>
    %79 = tpu.matmul %78, %57, %cst_32 {dimension_numbers = #tpu.dot_dimension_numbers<[1], [0], [0], [1], [0, 0, 1, 1], [], []>} : vector<8x16xbf16>, vector<16x4xbf16>, vector<8x4xf32> -> vector<8x4xf32>
    %80 = tpu.reciprocal %77 {approx = true} : vector<8x1xf32> -> vector<8x1xf32>
    %81 = vector.broadcast %80 : vector<8x1xf32> to vector<8x4xf32>
    %82 = arith.mulf %79, %81 : vector<8x4xf32>
    %c0_33 = arith.constant 0 : index
    %c8 = arith.constant 8 : index
    %83 = vector.load %arg7[%c0_33, %c8] : memref<8x32xf32, #tpu.memory_space<vmem>>, vector<8x4xf32>
    tpu.vector_store %arg7[%c0_33, %c8], %82 {strides = array<i32>} : memref<8x32xf32, #tpu.memory_space<vmem>>, vector<8x4xf32>,
    %84 = vector.extract_strided_slice %2 {offsets = [0, 12], sizes = [16, 4], strides = [1, 1]} : vector<16x32xbf16> to vector<16x4xbf16>
    %c3 = arith.constant 3 : index
    %c0_34 = arith.constant 0 : index
    %85 = vector.load %arg3[%c3, %c0_34] : memref<8x16xf32, #tpu.memory_space<vmem>>, vector<1x16xf32>
    %c0_35 = arith.constant 0 : index
    %c3_36 = arith.constant 3 : index
    %86 = vector.load %arg4[%c0_35, %c3_36] : memref<8x8xf32, #tpu.memory_space<vmem>>, vector<8x1xf32>
    %87 = vector.broadcast %86 : vector<8x1xf32> to vector<8x16xf32>
    %88 = vector.broadcast %85 : vector<1x16xf32> to vector<8x16xf32>
    %89 = arith.addf %87, %88 : vector<8x16xf32>
    %cst_37 = arith.constant 0.000000e+00 : f32
    %90 = vector.broadcast %cst_37 : f32 to vector<8x16xf32>
    %91 = arith.cmpf ogt, %89, %90 : vector<8x16xf32>
    %cst_38 = arith.constant 2.000000e-01 : f32
    %92 = vector.broadcast %cst_38 : f32 to vector<8x16xf32>
    %93 = arith.mulf %92, %89 : vector<8x16xf32>
    %94 = arith.select %91, %89, %93 : vector<8x16xi1>, vector<8x16xf32>
    %cst_39 = arith.constant dense<0xFF800000> : vector<8xf32>
    %95 = vector.multi_reduction <maximumf>, %94, %cst_39 [1] : vector<8x16xf32> to vector<8xf32>
    %96 = vector.shape_cast %95 : vector<8xf32> to vector<8x1xf32>
    %97 = vector.broadcast %96 : vector<8x1xf32> to vector<8x16xf32>
    %98 = arith.subf %94, %97 : vector<8x16xf32>
    %99 = math.exp %98 : vector<8x16xf32>
    %100 = arith.mulf %99, %1 : vector<8x16xf32>
    %cst_40 = arith.constant dense<0.000000e+00> : vector<8xf32>
    %101 = vector.multi_reduction <add>, %100, %cst_40 [1] : vector<8x16xf32> to vector<8xf32>
    %102 = vector.shape_cast %101 : vector<8xf32> to vector<8x1xf32>
    %cst_41 = arith.constant 9.99999968E-21 : f32
    %103 = vector.broadcast %cst_41 : f32 to vector<8x1xf32>
    %104 = arith.maximumf %102, %103 : vector<8x1xf32>
    %105 = arith.truncf %100 : vector<8x16xf32> to vector<8x16xbf16>
    %cst_42 = arith.constant dense<0.000000e+00> : vector<8x4xf32>
    %106 = tpu.matmul %105, %84, %cst_42 {dimension_numbers = #tpu.dot_dimension_numbers<[1], [0], [0], [1], [0, 0, 1, 1], [], []>} : vector<8x16xbf16>, vector<16x4xbf16>, vector<8x4xf32> -> vector<8x4xf32>
    %107 = tpu.reciprocal %104 {approx = true} : vector<8x1xf32> -> vector<8x1xf32>
    %108 = vector.broadcast %107 : vector<8x1xf32> to vector<8x4xf32>
    %109 = arith.mulf %106, %108 : vector<8x4xf32>
    %c0_43 = arith.constant 0 : index
    %c12 = arith.constant 12 : index
    %110 = vector.load %arg7[%c0_43, %c12] : memref<8x32xf32, #tpu.memory_space<vmem>>, vector<8x4xf32>
    tpu.vector_store %arg7[%c0_43, %c12], %109 {strides = array<i32>} : memref<8x32xf32, #tpu.memory_space<vmem>>, vector<8x4xf32>,
    %111 = vector.extract_strided_slice %2 {offsets = [0, 16], sizes = [16, 4], strides = [1, 1]} : vector<16x32xbf16> to vector<16x4xbf16>
    %c4_44 = arith.constant 4 : index
    %c0_45 = arith.constant 0 : index
    %112 = vector.load %arg3[%c4_44, %c0_45] : memref<8x16xf32, #tpu.memory_space<vmem>>, vector<1x16xf32>
    %c0_46 = arith.constant 0 : index
    %c4_47 = arith.constant 4 : index
    %113 = vector.load %arg4[%c0_46, %c4_47] : memref<8x8xf32, #tpu.memory_space<vmem>>, vector<8x1xf32>
    %114 = vector.broadcast %113 : vector<8x1xf32> to vector<8x16xf32>
    %115 = vector.broadcast %112 : vector<1x16xf32> to vector<8x16xf32>
    %116 = arith.addf %114, %115 : vector<8x16xf32>
    %cst_48 = arith.constant 0.000000e+00 : f32
    %117 = vector.broadcast %cst_48 : f32 to vector<8x16xf32>
    %118 = arith.cmpf ogt, %116, %117 : vector<8x16xf32>
    %cst_49 = arith.constant 2.000000e-01 : f32
    %119 = vector.broadcast %cst_49 : f32 to vector<8x16xf32>
    %120 = arith.mulf %119, %116 : vector<8x16xf32>
    %121 = arith.select %118, %116, %120 : vector<8x16xi1>, vector<8x16xf32>
    %cst_50 = arith.constant dense<0xFF800000> : vector<8xf32>
    %122 = vector.multi_reduction <maximumf>, %121, %cst_50 [1] : vector<8x16xf32> to vector<8xf32>
    %123 = vector.shape_cast %122 : vector<8xf32> to vector<8x1xf32>
    %124 = vector.broadcast %123 : vector<8x1xf32> to vector<8x16xf32>
    %125 = arith.subf %121, %124 : vector<8x16xf32>
    %126 = math.exp %125 : vector<8x16xf32>
    %127 = arith.mulf %126, %1 : vector<8x16xf32>
    %cst_51 = arith.constant dense<0.000000e+00> : vector<8xf32>
    %128 = vector.multi_reduction <add>, %127, %cst_51 [1] : vector<8x16xf32> to vector<8xf32>
    %129 = vector.shape_cast %128 : vector<8xf32> to vector<8x1xf32>
    %cst_52 = arith.constant 9.99999968E-21 : f32
    %130 = vector.broadcast %cst_52 : f32 to vector<8x1xf32>
    %131 = arith.maximumf %129, %130 : vector<8x1xf32>
    %132 = arith.truncf %127 : vector<8x16xf32> to vector<8x16xbf16>
    %cst_53 = arith.constant dense<0.000000e+00> : vector<8x4xf32>
    %133 = tpu.matmul %132, %111, %cst_53 {dimension_numbers = #tpu.dot_dimension_numbers<[1], [0], [0], [1], [0, 0, 1, 1], [], []>} : vector<8x16xbf16>, vector<16x4xbf16>, vector<8x4xf32> -> vector<8x4xf32>
    %134 = tpu.reciprocal %131 {approx = true} : vector<8x1xf32> -> vector<8x1xf32>
    %135 = vector.broadcast %134 : vector<8x1xf32> to vector<8x4xf32>
    %136 = arith.mulf %133, %135 : vector<8x4xf32>
    %c0_54 = arith.constant 0 : index
    %c16 = arith.constant 16 : index
    %137 = vector.load %arg7[%c0_54, %c16] : memref<8x32xf32, #tpu.memory_space<vmem>>, vector<8x4xf32>
    tpu.vector_store %arg7[%c0_54, %c16], %136 {strides = array<i32>} : memref<8x32xf32, #tpu.memory_space<vmem>>, vector<8x4xf32>,
    %138 = vector.extract_strided_slice %2 {offsets = [0, 20], sizes = [16, 4], strides = [1, 1]} : vector<16x32xbf16> to vector<16x4xbf16>
    %c5 = arith.constant 5 : index
    %c0_55 = arith.constant 0 : index
    %139 = vector.load %arg3[%c5, %c0_55] : memref<8x16xf32, #tpu.memory_space<vmem>>, vector<1x16xf32>
    %c0_56 = arith.constant 0 : index
    %c5_57 = arith.constant 5 : index
    %140 = vector.load %arg4[%c0_56, %c5_57] : memref<8x8xf32, #tpu.memory_space<vmem>>, vector<8x1xf32>
    %141 = vector.broadcast %140 : vector<8x1xf32> to vector<8x16xf32>
    %142 = vector.broadcast %139 : vector<1x16xf32> to vector<8x16xf32>
    %143 = arith.addf %141, %142 : vector<8x16xf32>
    %cst_58 = arith.constant 0.000000e+00 : f32
    %144 = vector.broadcast %cst_58 : f32 to vector<8x16xf32>
    %145 = arith.cmpf ogt, %143, %144 : vector<8x16xf32>
    %cst_59 = arith.constant 2.000000e-01 : f32
    %146 = vector.broadcast %cst_59 : f32 to vector<8x16xf32>
    %147 = arith.mulf %146, %143 : vector<8x16xf32>
    %148 = arith.select %145, %143, %147 : vector<8x16xi1>, vector<8x16xf32>
    %cst_60 = arith.constant dense<0xFF800000> : vector<8xf32>
    %149 = vector.multi_reduction <maximumf>, %148, %cst_60 [1] : vector<8x16xf32> to vector<8xf32>
    %150 = vector.shape_cast %149 : vector<8xf32> to vector<8x1xf32>
    %151 = vector.broadcast %150 : vector<8x1xf32> to vector<8x16xf32>
    %152 = arith.subf %148, %151 : vector<8x16xf32>
    %153 = math.exp %152 : vector<8x16xf32>
    %154 = arith.mulf %153, %1 : vector<8x16xf32>
    %cst_61 = arith.constant dense<0.000000e+00> : vector<8xf32>
    %155 = vector.multi_reduction <add>, %154, %cst_61 [1] : vector<8x16xf32> to vector<8xf32>
    %156 = vector.shape_cast %155 : vector<8xf32> to vector<8x1xf32>
    %cst_62 = arith.constant 9.99999968E-21 : f32
    %157 = vector.broadcast %cst_62 : f32 to vector<8x1xf32>
    %158 = arith.maximumf %156, %157 : vector<8x1xf32>
    %159 = arith.truncf %154 : vector<8x16xf32> to vector<8x16xbf16>
    %cst_63 = arith.constant dense<0.000000e+00> : vector<8x4xf32>
    %160 = tpu.matmul %159, %138, %cst_63 {dimension_numbers = #tpu.dot_dimension_numbers<[1], [0], [0], [1], [0, 0, 1, 1], [], []>} : vector<8x16xbf16>, vector<16x4xbf16>, vector<8x4xf32> -> vector<8x4xf32>
    %161 = tpu.reciprocal %158 {approx = true} : vector<8x1xf32> -> vector<8x1xf32>
    %162 = vector.broadcast %161 : vector<8x1xf32> to vector<8x4xf32>
    %163 = arith.mulf %160, %162 : vector<8x4xf32>
    %c0_64 = arith.constant 0 : index
    %c20 = arith.constant 20 : index
    %164 = vector.load %arg7[%c0_64, %c20] : memref<8x32xf32, #tpu.memory_space<vmem>>, vector<8x4xf32>
    tpu.vector_store %arg7[%c0_64, %c20], %163 {strides = array<i32>} : memref<8x32xf32, #tpu.memory_space<vmem>>, vector<8x4xf32>,
    %165 = vector.extract_strided_slice %2 {offsets = [0, 24], sizes = [16, 4], strides = [1, 1]} : vector<16x32xbf16> to vector<16x4xbf16>
    %c6 = arith.constant 6 : index
    %c0_65 = arith.constant 0 : index
    %166 = vector.load %arg3[%c6, %c0_65] : memref<8x16xf32, #tpu.memory_space<vmem>>, vector<1x16xf32>
    %c0_66 = arith.constant 0 : index
    %c6_67 = arith.constant 6 : index
    %167 = vector.load %arg4[%c0_66, %c6_67] : memref<8x8xf32, #tpu.memory_space<vmem>>, vector<8x1xf32>
    %168 = vector.broadcast %167 : vector<8x1xf32> to vector<8x16xf32>
    %169 = vector.broadcast %166 : vector<1x16xf32> to vector<8x16xf32>
    %170 = arith.addf %168, %169 : vector<8x16xf32>
    %cst_68 = arith.constant 0.000000e+00 : f32
    %171 = vector.broadcast %cst_68 : f32 to vector<8x16xf32>
    %172 = arith.cmpf ogt, %170, %171 : vector<8x16xf32>
    %cst_69 = arith.constant 2.000000e-01 : f32
    %173 = vector.broadcast %cst_69 : f32 to vector<8x16xf32>
    %174 = arith.mulf %173, %170 : vector<8x16xf32>
    %175 = arith.select %172, %170, %174 : vector<8x16xi1>, vector<8x16xf32>
    %cst_70 = arith.constant dense<0xFF800000> : vector<8xf32>
    %176 = vector.multi_reduction <maximumf>, %175, %cst_70 [1] : vector<8x16xf32> to vector<8xf32>
    %177 = vector.shape_cast %176 : vector<8xf32> to vector<8x1xf32>
    %178 = vector.broadcast %177 : vector<8x1xf32> to vector<8x16xf32>
    %179 = arith.subf %175, %178 : vector<8x16xf32>
    %180 = math.exp %179 : vector<8x16xf32>
    %181 = arith.mulf %180, %1 : vector<8x16xf32>
    %cst_71 = arith.constant dense<0.000000e+00> : vector<8xf32>
    %182 = vector.multi_reduction <add>, %181, %cst_71 [1] : vector<8x16xf32> to vector<8xf32>
    %183 = vector.shape_cast %182 : vector<8xf32> to vector<8x1xf32>
    %cst_72 = arith.constant 9.99999968E-21 : f32
    %184 = vector.broadcast %cst_72 : f32 to vector<8x1xf32>
    %185 = arith.maximumf %183, %184 : vector<8x1xf32>
    %186 = arith.truncf %181 : vector<8x16xf32> to vector<8x16xbf16>
    %cst_73 = arith.constant dense<0.000000e+00> : vector<8x4xf32>
    %187 = tpu.matmul %186, %165, %cst_73 {dimension_numbers = #tpu.dot_dimension_numbers<[1], [0], [0], [1], [0, 0, 1, 1], [], []>} : vector<8x16xbf16>, vector<16x4xbf16>, vector<8x4xf32> -> vector<8x4xf32>
    %188 = tpu.reciprocal %185 {approx = true} : vector<8x1xf32> -> vector<8x1xf32>
    %189 = vector.broadcast %188 : vector<8x1xf32> to vector<8x4xf32>
    %190 = arith.mulf %187, %189 : vector<8x4xf32>
    %c0_74 = arith.constant 0 : index
    %c24 = arith.constant 24 : index
    %191 = vector.load %arg7[%c0_74, %c24] : memref<8x32xf32, #tpu.memory_space<vmem>>, vector<8x4xf32>
    tpu.vector_store %arg7[%c0_74, %c24], %190 {strides = array<i32>} : memref<8x32xf32, #tpu.memory_space<vmem>>, vector<8x4xf32>,
    %192 = vector.extract_strided_slice %2 {offsets = [0, 28], sizes = [16, 4], strides = [1, 1]} : vector<16x32xbf16> to vector<16x4xbf16>
    %c7 = arith.constant 7 : index
    %c0_75 = arith.constant 0 : index
    %193 = vector.load %arg3[%c7, %c0_75] : memref<8x16xf32, #tpu.memory_space<vmem>>, vector<1x16xf32>
    %c0_76 = arith.constant 0 : index
    %c7_77 = arith.constant 7 : index
    %194 = vector.load %arg4[%c0_76, %c7_77] : memref<8x8xf32, #tpu.memory_space<vmem>>, vector<8x1xf32>
    %195 = vector.broadcast %194 : vector<8x1xf32> to vector<8x16xf32>
    %196 = vector.broadcast %193 : vector<1x16xf32> to vector<8x16xf32>
    %197 = arith.addf %195, %196 : vector<8x16xf32>
    %cst_78 = arith.constant 0.000000e+00 : f32
    %198 = vector.broadcast %cst_78 : f32 to vector<8x16xf32>
    %199 = arith.cmpf ogt, %197, %198 : vector<8x16xf32>
    %cst_79 = arith.constant 2.000000e-01 : f32
    %200 = vector.broadcast %cst_79 : f32 to vector<8x16xf32>
    %201 = arith.mulf %200, %197 : vector<8x16xf32>
    %202 = arith.select %199, %197, %201 : vector<8x16xi1>, vector<8x16xf32>
    %cst_80 = arith.constant dense<0xFF800000> : vector<8xf32>
    %203 = vector.multi_reduction <maximumf>, %202, %cst_80 [1] : vector<8x16xf32> to vector<8xf32>
    %204 = vector.shape_cast %203 : vector<8xf32> to vector<8x1xf32>
    %205 = vector.broadcast %204 : vector<8x1xf32> to vector<8x16xf32>
    %206 = arith.subf %202, %205 : vector<8x16xf32>
    %207 = math.exp %206 : vector<8x16xf32>
    %208 = arith.mulf %207, %1 : vector<8x16xf32>
    %cst_81 = arith.constant dense<0.000000e+00> : vector<8xf32>
    %209 = vector.multi_reduction <add>, %208, %cst_81 [1] : vector<8x16xf32> to vector<8xf32>
    %210 = vector.shape_cast %209 : vector<8xf32> to vector<8x1xf32>
    %cst_82 = arith.constant 9.99999968E-21 : f32
    %211 = vector.broadcast %cst_82 : f32 to vector<8x1xf32>
    %212 = arith.maximumf %210, %211 : vector<8x1xf32>
    %213 = arith.truncf %208 : vector<8x16xf32> to vector<8x16xbf16>
    %cst_83 = arith.constant dense<0.000000e+00> : vector<8x4xf32>
    %214 = tpu.matmul %213, %192, %cst_83 {dimension_numbers = #tpu.dot_dimension_numbers<[1], [0], [0], [1], [0, 0, 1, 1], [], []>} : vector<8x16xbf16>, vector<16x4xbf16>, vector<8x4xf32> -> vector<8x4xf32>
    %215 = tpu.reciprocal %212 {approx = true} : vector<8x1xf32> -> vector<8x1xf32>
    %216 = vector.broadcast %215 : vector<8x1xf32> to vector<8x4xf32>
    %217 = arith.mulf %214, %216 : vector<8x4xf32>
    %c0_84 = arith.constant 0 : index
    %c28 = arith.constant 28 : index
    %218 = vector.load %arg7[%c0_84, %c28] : memref<8x32xf32, #tpu.memory_space<vmem>>, vector<8x4xf32>
    tpu.vector_store %arg7[%c0_84, %c28], %217 {strides = array<i32>} : memref<8x32xf32, #tpu.memory_space<vmem>>, vector<8x4xf32>,
    %c0_85 = arith.constant 0 : index
    %c0_86 = arith.constant 0 : index
    %219 = vector.load %arg7[%c0_85, %c0_86] : memref<8x32xf32, #tpu.memory_space<vmem>>, vector<8x32xf32>
    %c0_87 = arith.constant 0 : index
    %c0_88 = arith.constant 0 : index
    %220 = vector.load %arg5[%c0_87, %c0_88] : memref<1x32xf32, #tpu.memory_space<vmem>>, vector<1x32xf32>
    %221 = vector.broadcast %220 : vector<1x32xf32> to vector<8x32xf32>
    %222 = arith.addf %219, %221 : vector<8x32xf32>
    %cst_89 = arith.constant 0.000000e+00 : f32
    %223 = vector.broadcast %cst_89 : f32 to vector<8x32xf32>
    %224 = arith.cmpf ogt, %222, %223 : vector<8x32xf32>
    %cst_90 = arith.constant 0.000000e+00 : f32
    %225 = vector.broadcast %cst_90 : f32 to vector<8x32xf32>
    %226 = arith.minimumf %222, %225 : vector<8x32xf32>
    %227 = math.exp %226 : vector<8x32xf32>
    %cst_91 = arith.constant 1.000000e+00 : f32
    %228 = vector.broadcast %cst_91 : f32 to vector<8x32xf32>
    %229 = arith.subf %227, %228 : vector<8x32xf32>
    %230 = arith.select %224, %222, %229 : vector<8x32xi1>, vector<8x32xf32>
    %c0_92 = arith.constant 0 : index
    %c0_93 = arith.constant 0 : index
    %231 = vector.load %arg6[%c0_92, %c0_93] : memref<8x32xf32, #tpu.memory_space<vmem>>, vector<8x32xf32>
    tpu.vector_store %arg6[%c0_92, %c0_93], %230 {strides = array<i32>} : memref<8x32xf32, #tpu.memory_space<vmem>>, vector<8x32xf32>,
    return
  }
  func.func @transform_0(%arg0: i32) -> (i32, i32) {
    %c0_i32 = arith.constant 0 : i32
    %c0_i32_0 = arith.constant 0 : i32
    return %arg0, %c0_i32 : i32, i32
  }
  func.func @transform_1(%arg0: i32) -> (i32, i32) {
    %c0_i32 = arith.constant 0 : i32
    %c0_i32_0 = arith.constant 0 : i32
    %c0_i32_1 = arith.constant 0 : i32
    return %c0_i32, %c0_i32_0 : i32, i32
  }
  func.func @transform_2(%arg0: i32) -> (i32, i32) {
    %c0_i32 = arith.constant 0 : i32
    %c0_i32_0 = arith.constant 0 : i32
    %c0_i32_1 = arith.constant 0 : i32
    return %c0_i32, %c0_i32_0 : i32, i32
  }
  func.func @transform_3(%arg0: i32) -> (i32, i32) {
    %c0_i32 = arith.constant 0 : i32
    %c0_i32_0 = arith.constant 0 : i32
    return %arg0, %c0_i32 : i32, i32
  }
  func.func @transform_4(%arg0: i32) -> (i32, i32) {
    %c0_i32 = arith.constant 0 : i32
    %c0_i32_0 = arith.constant 0 : i32
    %c0_i32_1 = arith.constant 0 : i32
    return %c0_i32, %c0_i32_0 : i32, i32
  }
  func.func @transform_5(%arg0: i32) -> (i32, i32) {
    %c0_i32 = arith.constant 0 : i32
    %c0_i32_0 = arith.constant 0 : i32
    return %arg0, %c0_i32 : i32, i32
  }
}

module attributes {stable_mosaic.version = 11 : i64} {
  func.func @_attn_kernel(%arg0: i32, %arg1: memref<8x16xbf16, #tpu.memory_space<vmem>>, %arg2: memref<16x8xbf16, #tpu.memory_space<vmem>>, %arg3: memref<1x16xf32, #tpu.memory_space<vmem>>, %arg4: memref<8x1xf32, #tpu.memory_space<vmem>>, %arg5: memref<8x32xf32, #tpu.memory_space<vmem>>, %arg6: memref<32x8xbf16, #tpu.memory_space<vmem>>, %arg7: memref<1x8xf32, #tpu.memory_space<vmem>>, %arg8: memref<8x8xf32, #tpu.memory_space<vmem>>, %arg9: memref<8x8xf32, #tpu.memory_space<vmem>>) attributes {dimension_semantics = [#tpu.dimension_semantics<parallel>], iteration_bounds = array<i64: 2>, scalar_prefetch = 0 : i64, scratch_operands = 1 : i64, tpu.core_type = #tpu.core_type<tc>, window_params = [{transform_indices = @transform_0, window_bounds = array<i64: 8, 16>}, {pipeline_mode = #tpu.pipeline_mode<synchronous>, transform_indices = @transform_1, window_bounds = array<i64: 16, 8>}, {pipeline_mode = #tpu.pipeline_mode<synchronous>, transform_indices = @transform_2, window_bounds = array<i64: 1, 16>}, {transform_indices = @transform_3, window_bounds = array<i64: 8, 1>}, {transform_indices = @transform_4, window_bounds = array<i64: 8, 32>}, {pipeline_mode = #tpu.pipeline_mode<synchronous>, transform_indices = @transform_5, window_bounds = array<i64: 32, 8>}, {pipeline_mode = #tpu.pipeline_mode<synchronous>, transform_indices = @transform_6, window_bounds = array<i64: 1, 8>}, {transform_indices = @transform_7, window_bounds = array<i64: 8, 8>}]} {
    %c0 = arith.constant 0 : index
    %c0_0 = arith.constant 0 : index
    %0 = vector.load %arg1[%c0, %c0_0] : memref<8x16xbf16, #tpu.memory_space<vmem>>, vector<8x16xbf16>
    %1 = arith.extf %0 : vector<8x16xbf16> to vector<8x16xf32>
    %c0_1 = arith.constant 0 : index
    %c0_2 = arith.constant 0 : index
    %2 = vector.load %arg2[%c0_1, %c0_2] : memref<16x8xbf16, #tpu.memory_space<vmem>>, vector<16x8xbf16>
    %c0_3 = arith.constant 0 : index
    %c0_4 = arith.constant 0 : index
    %3 = vector.load %arg3[%c0_3, %c0_4] : memref<1x16xf32, #tpu.memory_space<vmem>>, vector<1x16xf32>
    %c0_5 = arith.constant 0 : index
    %c0_6 = arith.constant 0 : index
    %4 = vector.load %arg4[%c0_5, %c0_6] : memref<8x1xf32, #tpu.memory_space<vmem>>, vector<8x1xf32>
    %5 = vector.broadcast %4 : vector<8x1xf32> to vector<8x16xf32>
    %6 = vector.broadcast %3 : vector<1x16xf32> to vector<8x16xf32>
    %7 = arith.addf %5, %6 : vector<8x16xf32>
    %cst = arith.constant 0.000000e+00 : f32
    %8 = vector.broadcast %cst : f32 to vector<8x16xf32>
    %9 = arith.cmpf ogt, %7, %8 : vector<8x16xf32>
    %cst_7 = arith.constant 2.000000e-01 : f32
    %10 = vector.broadcast %cst_7 : f32 to vector<8x16xf32>
    %11 = arith.mulf %10, %7 : vector<8x16xf32>
    %12 = arith.select %9, %7, %11 : vector<8x16xi1>, vector<8x16xf32>
    %cst_8 = arith.constant dense<0xFF800000> : vector<8xf32>
    %13 = vector.multi_reduction <maximumf>, %12, %cst_8 [1] : vector<8x16xf32> to vector<8xf32>
    %14 = vector.shape_cast %13 : vector<8xf32> to vector<8x1xf32>
    %15 = vector.broadcast %14 : vector<8x1xf32> to vector<8x16xf32>
    %16 = arith.subf %12, %15 : vector<8x16xf32>
    %17 = math.exp %16 : vector<8x16xf32>
    %18 = arith.mulf %17, %1 : vector<8x16xf32>
    %cst_9 = arith.constant dense<0.000000e+00> : vector<8xf32>
    %19 = vector.multi_reduction <add>, %18, %cst_9 [1] : vector<8x16xf32> to vector<8xf32>
    %20 = vector.shape_cast %19 : vector<8xf32> to vector<8x1xf32>
    %cst_10 = arith.constant 9.99999968E-21 : f32
    %21 = vector.broadcast %cst_10 : f32 to vector<8x1xf32>
    %22 = arith.maximumf %20, %21 : vector<8x1xf32>
    %23 = arith.truncf %18 : vector<8x16xf32> to vector<8x16xbf16>
    %cst_11 = arith.constant dense<0.000000e+00> : vector<8x8xf32>
    %24 = tpu.matmul %23, %2, %cst_11 {dimension_numbers = #tpu.dot_dimension_numbers<[1], [0], [0], [1], [0, 0, 1, 1], [], []>} : vector<8x16xbf16>, vector<16x8xbf16>, vector<8x8xf32> -> vector<8x8xf32>
    %25 = tpu.reciprocal %22 {approx = true} : vector<8x1xf32> -> vector<8x1xf32>
    %26 = vector.broadcast %25 : vector<8x1xf32> to vector<8x8xf32>
    %27 = arith.mulf %24, %26 : vector<8x8xf32>
    %c0_12 = arith.constant 0 : index
    %c0_13 = arith.constant 0 : index
    %28 = vector.load %arg5[%c0_12, %c0_13] : memref<8x32xf32, #tpu.memory_space<vmem>>, vector<8x32xf32>
    %29 = arith.truncf %28 : vector<8x32xf32> to vector<8x32xbf16>
    %c0_14 = arith.constant 0 : index
    %c0_15 = arith.constant 0 : index
    %30 = vector.load %arg6[%c0_14, %c0_15] : memref<32x8xbf16, #tpu.memory_space<vmem>>, vector<32x8xbf16>
    %cst_16 = arith.constant dense<0.000000e+00> : vector<8x8xf32>
    %31 = tpu.matmul %29, %30, %cst_16 {dimension_numbers = #tpu.dot_dimension_numbers<[1], [0], [0], [1], [0, 0, 1, 1], [], []>} : vector<8x32xbf16>, vector<32x8xbf16>, vector<8x8xf32> -> vector<8x8xf32>
    %32 = arith.addf %27, %31 : vector<8x8xf32>
    %c0_17 = arith.constant 0 : index
    %c0_18 = arith.constant 0 : index
    %33 = vector.load %arg7[%c0_17, %c0_18] : memref<1x8xf32, #tpu.memory_space<vmem>>, vector<1x8xf32>
    %34 = vector.broadcast %33 : vector<1x8xf32> to vector<8x8xf32>
    %35 = arith.addf %32, %34 : vector<8x8xf32>
    %c0_19 = arith.constant 0 : index
    %c0_20 = arith.constant 0 : index
    %36 = vector.load %arg8[%c0_19, %c0_20] : memref<8x8xf32, #tpu.memory_space<vmem>>, vector<8x8xf32>
    tpu.vector_store %arg8[%c0_19, %c0_20], %35 {strides = array<i32>} : memref<8x8xf32, #tpu.memory_space<vmem>>, vector<8x8xf32>,
    return
  }
  func.func @transform_0(%arg0: i32) -> (i32, i32) {
    %c0_i32 = arith.constant 0 : i32
    %c0_i32_0 = arith.constant 0 : i32
    return %arg0, %c0_i32 : i32, i32
  }
  func.func @transform_1(%arg0: i32) -> (i32, i32) {
    %c0_i32 = arith.constant 0 : i32
    %c0_i32_0 = arith.constant 0 : i32
    %c0_i32_1 = arith.constant 0 : i32
    return %c0_i32, %c0_i32_0 : i32, i32
  }
  func.func @transform_2(%arg0: i32) -> (i32, i32) {
    %c0_i32 = arith.constant 0 : i32
    %c0_i32_0 = arith.constant 0 : i32
    %c0_i32_1 = arith.constant 0 : i32
    return %c0_i32, %c0_i32_0 : i32, i32
  }
  func.func @transform_3(%arg0: i32) -> (i32, i32) {
    %c0_i32 = arith.constant 0 : i32
    %c0_i32_0 = arith.constant 0 : i32
    return %arg0, %c0_i32 : i32, i32
  }
  func.func @transform_4(%arg0: i32) -> (i32, i32) {
    %c0_i32 = arith.constant 0 : i32
    %c0_i32_0 = arith.constant 0 : i32
    return %arg0, %c0_i32 : i32, i32
  }
  func.func @transform_5(%arg0: i32) -> (i32, i32) {
    %c0_i32 = arith.constant 0 : i32
    %c0_i32_0 = arith.constant 0 : i32
    %c0_i32_1 = arith.constant 0 : i32
    return %c0_i32, %c0_i32_0 : i32, i32
  }
  func.func @transform_6(%arg0: i32) -> (i32, i32) {
    %c0_i32 = arith.constant 0 : i32
    %c0_i32_0 = arith.constant 0 : i32
    %c0_i32_1 = arith.constant 0 : i32
    return %c0_i32, %c0_i32_0 : i32, i32
  }
  func.func @transform_7(%arg0: i32) -> (i32, i32) {
    %c0_i32 = arith.constant 0 : i32
    %c0_i32_0 = arith.constant 0 : i32
    return %arg0, %c0_i32 : i32, i32
  }
}

</mosaic_0001>

<bundles_post_ra>
// kernel: gnn_gat_forward.4
= control target key start
LH: loop header
LB: loop body
LE: loop exit
PB: predicated region body
PF: predicated region fallthrough
CT: control target
= control target key end

     0   :  { %s434_s15 = smov 0   ;;  %s466_s0 = inlined_call_operand.vmem [shape: f32[16,32], index: 0, kind: input, shape index: {}]   ;;  %s467_s1 = inlined_call_operand.vmem [shape: bf16[32,32], index: 1, kind: input, shape index: {}]   ;;  %s468_s2 = inlined_call_operand.vmem [shape: bf16[32,16], index: 2, kind: input, shape index: {}]   ;;  %s469_s3 = inlined_call_operand.vmem [shape: bf16[16,32], index: 3, kind: output, shape index: {0}]   ;;  %s470_s4 = inlined_call_operand.vmem [shape: f32[16,16], index: 4, kind: output, shape index: {1}]  }
   0x1 LB: > { %s361_s16 = sadd.s32 4294967295, %s407_s15   ;;  %p365_p0 = scmp.ge.s32.totalorder %s407_s15, 1  ;;  %s407_s15 = sphi %s434_s15, %s15_s15  }
   0x2   : > { %p164_p1 = scmp.lt.s32.totalorder %s407_s15, 3 }
   0x4   : > { %p165_p2 = pnand %p365_p0, %p164_p1 }
   0x5   : > { %p192_p3 = scmp.lt.s32.totalorder (!%p165_p2), %s361_s16, 1 }
   0x6   : > { %168 = sbr.rel (%p165_p2) target bundleno = 281 (0x119), region = 32 }
   0xb   : > { %v390_v0 = vld [vmem:[%s467_s1 + $0x8] sm:$0xff]  ;;  %v389_v2 = vld [vmem:[%s467_s1] sm:$0xff]  ;;  %s472_s16 = smov (!%p192_p3, %s361_s16), 1  ;;  %vm223_vm0 = vcmask 261120   ;;  %vm241_vm1 = vcmask 257024   ;;  %vm275_vm2 = vcmask 130048  }
   0xc   : > { %v392_v1 = vld [vmem:[%s468_s2 + $0x8] sm:$0xff]  ;;  %233 = vmatpush.bf16.msra.mxu0 %v390_v0  ;;  %s366_s23 = sshll.u32 %s472_s16, 3  ;;  %v391_v5 = vld [vmem:[%s468_s2] sm:$0xff]  ;;  %s367_s29 = sshll.u32 %s472_s16, 2 }
   0xd   : > { %268 = vmatpush.bf16.msra.mxu1 %v392_v1  ;;  %s195_s26 = scalar_lea.vmem %s466_s0, %s366_s23  ;;  %s199_s6 = scalar_lea.vmem %s469_s3, %s367_s29 }
   0xe   : > { %v205_v3 = vld [vmem:[%s195_s26] sm:$0xff]  ;;  %s203_s9 = scalar_lea.vmem %s470_s4, %s366_s23 }
   0xf   : > { %v206_v4 = vpack.c.bf16 %v205_v3, %v205_v3 }
  0x10   : > { %234 = vmatpush.bf16.msra.mxu0 %v389_v2 }
  0x11   : > { %269 = vmatpush.bf16.msra.mxu1 %v391_v5 }
  0x13   : > { %377 = vmatmul.msk.bf16.vlgmr.msra.gmra.mxu0 %vm223_vm0, %v206_v4 }
  0x90   : > { %v236_v6 = vpop.f32.mrf.mxu0 }
  0x91   : > { %v240_v7 = vpack.c.bf16 %v236_v6, %v236_v6 }
  0x93   : > { %242 = vst.msk [vmem:[%s199_s6] sm:$0xf] %vm241_vm1, %v240_v7  ;;  %386 = vmatmul.msk.bf16.vlgmr.msra.gmra.mxu1 %vm223_vm0, %v240_v7 }
  0x98   : > { %v238_v8 = vpop.f32.mrf.mxu0 }
 0x110   : > { %v271_v9 = vpop.f32.mrf.mxu1 }
 0x111   : > { %276 = vst.msk [vmem:[%s203_s9] sm:$0xff] %vm275_vm2, %v271_v9 }
 0x118   : > { %v273_v10 = vpop.f32.mrf.mxu1 }
 0x119 PF: > { %s15_s15 = sadd.s32 1, %s407_s15  }
 0x11a   : > { %p12_p4 = scmp.ge.s32.totalorder %s15_s15, 4  }
 0x11c   :  { %14 = sbr.rel (!%p12_p4) target bundleno = 1 (0x1), region = 74 }

// kernel: gnn_gat_forward.6
= control target key start
LH: loop header
LB: loop body
LE: loop exit
PB: predicated region body
PF: predicated region fallthrough
CT: control target
= control target key end

     0   :  { %s414_s15 = smov 0   ;;  %s443_s0 = inlined_call_operand.vmem [shape: f32[16,32], index: 0, kind: input, shape index: {}]   ;;  %s444_s1 = inlined_call_operand.vmem [shape: bf16[32,8], index: 1, kind: input, shape index: {}]   ;;  %s445_s2 = inlined_call_operand.vmem [shape: bf16[8,2], index: 2, kind: input, shape index: {}]   ;;  %s446_s3 = inlined_call_operand.vmem [shape: bf16[16,8], index: 3, kind: output, shape index: {0}]   ;;  %s447_s4 = inlined_call_operand.vmem [shape: f32[16,2], index: 4, kind: output, shape index: {1}]  }
   0x1 LB: > { %s351_s16 = sadd.s32 4294967295, %s387_s15   ;;  %p355_p0 = scmp.ge.s32.totalorder %s387_s15, 1  ;;  %s387_s15 = sphi %s414_s15, %s15_s15  }
   0x2   : > { %p164_p1 = scmp.lt.s32.totalorder %s387_s15, 3 }
   0x4   : > { %p165_p2 = pnand %p355_p0, %p164_p1 }
   0x5   : > { %p192_p3 = scmp.lt.s32.totalorder (!%p165_p2), %s351_s16, 1 }
   0x6   : > { %168 = sbr.rel (%p165_p2) target bundleno = 281 (0x119), region = 32 }
   0xb   : > { %v372_v0 = vld [vmem:[%s444_s1 + $0x8] sm:$0xff]  ;;  %v371_v1 = vld [vmem:[%s444_s1] sm:$0xff]  ;;  %s449_s16 = smov (!%p192_p3, %s351_s16), 1  ;;  %vm223_vm0 = vcmask 261120   ;;  %vm248_vm1 = vcmask 1043456   ;;  %vm241_vm2 = vcmask 60416  }
   0xc   : > { %233 = vmatpush.bf16.msra.mxu0 %v372_v0  ;;  %s356_s21 = sshll.u32 %s449_s16, 3  ;;  %v243_v4 = vld [vmem:[%s445_s2] sm:$0xf]  ;;  %s357_s27 = sshll.u32 %s449_s16, 2  ;;  %vm244_vm3 = vcmask 64512   ;;  %vm265_vm4 = vcmask 15360  }
   0xd   : > { %s195_s24 = scalar_lea.vmem %s443_s0, %s356_s21  ;;  %v250_v5 = vsel %vm248_vm1, %v243_v4, 0  ;;  %s199_s30 = scalar_lea.vmem %s446_s3, %s357_s27 }
   0xe   : > { %v205_v2 = vld [vmem:[%s195_s24] sm:$0xff]  ;;  %259 = vmatpush.bf16.msra.mxu1 %v250_v5  ;;  %s203_s7 = scalar_lea.vmem %s447_s4, %s356_s21 }
   0xf   : > { %v206_v3 = vpack.c.bf16 %v205_v2, %v205_v2 }
  0x10   : > { %234 = vmatpush.bf16.msra.mxu0 %v371_v1 }
  0x13   : > { %367 = vmatmul.msk.bf16.vlgmr.msra.gmra.mxu0 %vm223_vm0, %v206_v3 }
  0x90   : > { %v236_v6 = vpop.f32.mrf.mxu0 }
  0x91   : > { %v240_v7 = vpack.c.bf16 %v236_v6, %v236_v6 }
  0x93   : > { %242 = vst.msk [vmem:[%s199_s30] sm:$0xf] %vm241_vm2, %v240_v7  ;;  %368 = vmatmul.msk.bf16.vlgmr.msra.gmra.mxu1 %vm244_vm3, %v240_v7 }
  0x98   : > { %v238_v8 = vpop.f32.mrf.mxu0 }
 0x110   : > { %v261_v9 = vpop.f32.mrf.mxu1 }
 0x111   : > { %266 = vst.msk [vmem:[%s203_s7] sm:$0xff] %vm265_vm4, %v261_v9 }
 0x118   : > { %v263_v10 = vpop.f32.mrf.mxu1 }
 0x119 PF: > { %s15_s15 = sadd.s32 1, %s387_s15  }
 0x11a   : > { %p12_p4 = scmp.ge.s32.totalorder %s15_s15, 4  }
 0x11c   :  { %14 = sbr.rel (!%p12_p4) target bundleno = 1 (0x1), region = 74 }

// kernel: gnn_gat_forward.7
= control target key start
LH: loop header
LB: loop body
LE: loop exit
PB: predicated region body
PF: predicated region fallthrough
CT: control target
= control target key end

     0   :  { %s577_s24 = smov 0   ;;  %s627_s0 = inlined_call_operand.vmem [shape: bf16[16,16], index: 0, kind: input, shape index: {}]   ;;  %s628_s1 = inlined_call_operand.vmem [shape: bf16[16,8], index: 1, kind: input, shape index: {}]   ;;  %s629_s2 = inlined_call_operand.vmem [shape: f32[1,16], index: 2, kind: input, shape index: {}]   ;;  %s630_s3 = inlined_call_operand.vmem [shape: f32[16,1], index: 3, kind: input, shape index: {}]   ;;  %s631_s4 = inlined_call_operand.vmem [shape: f32[16,32], index: 4, kind: input, shape index: {}]   ;;  %s632_s5 = inlined_call_operand.vmem [shape: bf16[32,8], index: 5, kind: input, shape index: {}]   ;;  %s633_s6 = inlined_call_operand.vmem [shape: f32[1,8], index: 6, kind: input, shape index: {}]   ;;  %s634_s7 = inlined_call_operand.vmem [shape: f32[16,8], index: 7, kind: output, shape index: {}]  }
   0x1 LB: > { %s484_s25 = sadd.s32 4294967295, %s534_s24   ;;  %p488_p0 = scmp.ge.s32.totalorder %s534_s24, 1  ;;  %s534_s24 = sphi %s577_s24, %s17_s24  }
   0x2   : > { %p254_p1 = scmp.lt.s32.totalorder %s534_s24, 3 }
   0x4   : > { %p255_p2 = pnand %p488_p0, %p254_p1 }
   0x5   : > { %p292_p3 = scmp.lt.s32.totalorder (!%p255_p2), %s484_s25, 1 }
   0x6   : > { %258 = sbr.rel (%p255_p2) target bundleno = 401 (0x191), region = 48 }
   0xb   : > { %v536_v0 = vmov 0   ;;  %s636_s25 = smov (!%p292_p3, %s484_s25), 1  ;;  %v522_v2 = vld [vmem:[%s629_s2] ss:$0 sm:$0xff]  ;;  %vm327_vm1 = vcmask 130048   ;;  %v511_v8 = vld [vmem:[%s632_s5 + $0x8] sm:$0xff] }
   0xc   : > { %521 = vset.pattern.permute.xlu0 %v536_v0  ;;  %s588_s26 = sshll.u32 %s636_s25, 3  ;;  %392 = vmatpush.bf16.msra.mxu1 %v511_v8  ;;  %v510_v9 = vld [vmem:[%s632_s5] sm:$0xff]  ;;  %vm382_vm2 = vcmask 261120   ;;  %s489_s18 = sshll.u32 %s636_s25, 2  ;;  %vm405_vm3 = vcmask 64512  }
   0xd   : > { %s299_s29 = scalar_lea.vmem %s630_s3, %s588_s26  ;;  %s303_s13 = scalar_lea.vmem %s631_s4, %s588_s26  ;;  %v509_v11 = vld [vmem:[%s628_s1] sm:$0xff] }
   0xe   : > { %v314_v1 = vld [vmem:[%s299_s29] sm:$0xff]  ;;  %356 = vmatpush.bf16.msra.mxu0 %v509_v11  ;;  %s295_s21 = scalar_lea.vmem %s627_s0, %s489_s18  ;;  %s307_s28 = scalar_lea.vmem %s634_s7, %s588_s26 }
   0xf   : > { %317 = vperm.xlu0 %521, %v314_v1   ;;  %v364_v10 = vld [vmem:[%s303_s13] sm:$0xff] }
  0x10   : > { %393 = vmatpush.bf16.msra.mxu1 %v510_v9  ;;  %v365_v12 = vpack.c.bf16 %v364_v10, %v364_v10  ;;  %v309_v16 = vld [vmem:[%s295_s21] sm:$0xf] }
  0x11   : > { %v310_v17 = vunpack.c.l.bf16 %v309_v16  ;;  %v523_v29 = vld [vmem:[%s633_s6] ss:$0 sm:$0xff] }
  0x13   : > { %506 = vmatmul.msk.bf16.vlgmr.msra.gmra.mxu1 %vm382_vm2, %v365_v12 }
  0x81   : > { %v318_v3 = vpop.permute.xlu0 %317 }
  0x82   : > { %v323_v4 = vadd.f32 %v522_v2, %v318_v3 }
  0x84   : > { %v325_v5 = vmul.f32 0.2, %v323_v4  ;;  %vm324_vm0 = vcmp.gt.f32.partialorder %v323_v4, 0.0 }
  0x86   : > { %v326_v6 = vsel %vm324_vm0, %v323_v4, %v325_v5 }
  0x87   : > { %v328_v7 = vsel %vm327_vm1, %v326_v6, -inf }
  0x88   : > { %329 = vmax.xlane.f32.xlu0 %v328_v7 }
  0x90   : > { %v395_v22 = vpop.f32.mrf.mxu1 }
  0x98   : > { %v397_v23 = vpop.f32.mrf.mxu1 }
  0xfb   : > { %v330_v13 = vpop.xlane.xlu0 %329 }
  0xfc   : > { %v331_v14 = vsub.f32 %v326_v6, %v330_v13 }
  0xfe   : > { %v332_v15 = vmul.f32 1.442695, %v331_v14 }
 0x100   : > { %524 = vpow2.f32 %v332_v15 }
 0x106   : > { %v525_v18 = vpop.eup %524 }
 0x107   : > { %v334_v19 = vmul.f32 %v525_v18, %v310_v17 }
 0x109   : > { %v335_v20 = vsel %vm327_vm1, %v334_v19, 0.0  ;;  %v339_v21 = vpack.c.bf16 %v334_v19, %v334_v19 }
 0x10a   : > { %336 = vadd.xlane.f32.xlu1 %v335_v20 }
 0x10b   : > { %497 = vmatmul.msk.bf16.vlgmr.msra.gmra.mxu0 %vm327_vm1, %v339_v21 }
 0x17d   : > { %v337_v24 = vpop.xlane.xlu1 %336 }
 0x17e   : > { %v338_v25 = vmax.f32 %v337_v24, 1e-20 }
 0x180   : > { %526 = vrcp.f32 %v338_v25 }
 0x186   : > { %v527_v26 = vpop.eup %526 }
 0x188   : > { %v358_v27 = vpop.f32.mrf.mxu0 }
 0x189   : > { %v363_v28 = vmul.f32 %v527_v26, %v358_v27 }
 0x18b   : > { %v399_v30 = vadd.f32 %v395_v22, %v363_v28 }
 0x18d   : > { %v404_v31 = vadd.f32 %v523_v29, %v399_v30 }
 0x18f   : > { %406 = vst.msk [vmem:[%s307_s28] sm:$0xff] %vm405_vm3, %v404_v31 }
 0x190   : > { %v360_v32 = vpop.f32.mrf.mxu0 }
 0x191 PF: > { %s17_s24 = sadd.s32 1, %s534_s24  }
 0x192   : > { %p14_p4 = scmp.ge.s32.totalorder %s17_s24, 4  }
 0x194   :  { %16 = sbr.rel (!%p14_p4) target bundleno = 1 (0x1), region = 84 }

// kernel: gnn_gat_forward.5
= control target key start
LH: loop header
LB: loop body
LE: loop exit
PB: predicated region body
PF: predicated region fallthrough
CT: control target
= control target key end

     0   :  { %s895_s18 = smov 0   ;;  %s1029_s0 = inlined_call_operand.vmem [shape: bf16[16,16], index: 0, kind: input, shape index: {}]   ;;  %s1030_s1 = inlined_call_operand.vmem [shape: bf16[16,32], index: 1, kind: input, shape index: {}]   ;;  %s1031_s2 = inlined_call_operand.vmem [shape: f32[8,16], index: 2, kind: input, shape index: {}]   ;;  %s1032_s3 = inlined_call_operand.vmem [shape: f32[16,8], index: 3, kind: input, shape index: {}]   ;;  %s1033_s4 = inlined_call_operand.vmem [shape: f32[1,32], index: 4, kind: input, shape index: {}]   ;;  %s1034_s5 = inlined_call_operand.vmem [shape: f32[16,32], index: 5, kind: output, shape index: {}]  }
   0x1 LB: > { %s729_s19 = sadd.s32 4294967295, %s841_s18   ;;  %p733_p0 = scmp.ge.s32.totalorder %s841_s18, 1  ;;  %s841_s18 = sphi %s895_s18, %s15_s18  }
   0x2   : > { %p195_p1 = scmp.lt.s32.totalorder %s841_s18, 3 }
   0x4   : > { %p196_p2 = pnand %p733_p0, %p195_p1 }
   0x5   : > { %p225_p3 = scmp.lt.s32.totalorder (!%p196_p2), %s729_s19, 1  ;;  %s850_s26 = smov (!%p196_p2), 120  }
   0x6   : > { %199 = sbr.rel (%p196_p2) target bundleno = 613 (0x265), region = 40  ;;  %s852_s16 = smov (!%p196_p2), 124  }
   0x7   : > { %s853_s17 = smov (!%p196_p2), 104   ;;  %s854_s20 = smov (!%p196_p2), 116  }
   0x8   : > { %s855_s21 = smov (!%p196_p2), 112   ;;  %s856_s23 = smov (!%p196_p2), 108  }
   0x9   : > { %s857_s24 = smov (!%p196_p2), 100   ;;  %s858_s6 = smov (!%p196_p2), 8  }
   0xa   : > { %s859_s7 = smov (!%p196_p2), 4   ;;  %s860_s8 = smov (!%p196_p2), 12  }
   0xb   : > { %v906_v0 = vld [vmem:[%s1030_s1] sm:$0xff]  ;;  %v843_v1 = vmov 2   ;;  %v844_v2 = vmov 0   ;;  %s1036_s19 = smov (!%p225_p3, %s729_s19), 1  ;;  %v845_v3 = vmov 6   ;;  %v846_v5 = vmov 3  }
   0xc   : > { %783 = vset.pattern.permute.xlu0 %v843_v1  ;;  %785 = vset.pattern.permute.xlu1 %v844_v2  ;;  %s735_s22 = sshll.u32 %s1036_s19, 3  ;;  %v847_v6 = vmov 1   ;;  %v848_v7 = vmov 7   ;;  %v849_v8 = vmov 4   ;;  %v851_v9 = vmov 5   ;;  %s734_s27 = sshll.u32 %s1036_s19, 2 }
   0xd   : > { %787 = vset.pattern.permute.xlu2 %v845_v3  ;;  %283 = vmatpush.bf16.msra.mxu0 %v906_v0  ;;  %s232_s25 = scalar_lea.vmem %s1032_s3, %s735_s22  ;;  %v792_v10 = vld [vmem:[%s1031_s2 + $0x2] ss:$0 sm:$0xff]  ;;  %v793_v11 = vld [vmem:[%s1031_s2] ss:$0 sm:$0xff]  ;;  %vm254_vm0 = vcmask 130048   ;;  %s228_s30 = scalar_lea.vmem %s1029_s0, %s734_s27  ;;  %vm291_vm9 = vcmask 31744  }
   0xe   : > { %v345_v4 = vld [vmem:[%s232_s25] sm:$0xff]  ;;  %s861_s9 = smov 16   ;;  %s862_s10 = smov 24   ;;  %vm342_vm10 = vcmask 64544   ;;  %vm393_vm11 = vcmask 97344   ;;  %vm444_vm12 = vcmask 130144  }
   0xf   : > { %348 = vperm.xlu0 %783, %v345_v4   ;;  %246 = vperm.xlu1 %785, %v345_v4   ;;  %v794_v20 = vld [vmem:[%s1031_s2 + $0x3] ss:$0 sm:$0xff]  ;;  %v795_v24 = vld [vmem:[%s1031_s2 + $0x1] ss:$0 sm:$0xff]  ;;  %v796_v25 = vld [vmem:[%s1031_s2 + $0x6] ss:$0 sm:$0xff] }
  0x10   : > { %552 = vperm.xlu2 %787, %v345_v4   ;;  %v797_v36 = vld [vmem:[%s1031_s2 + $0x7] ss:$0 sm:$0xff]  ;;  %v798_v44 = vld [vmem:[%s1031_s2 + $0x4] ss:$0 sm:$0xff]  ;;  %v799_v53 = vld [vmem:[%s1031_s2 + $0x5] ss:$0 sm:$0xff] }
  0x11   : > { %v238_v1 = vld [vmem:[%s228_s30] sm:$0xf]  ;;  %s863_s11 = smov 28   ;;  %s864_s12 = smov 20   ;;  %vm495_vm13 = vcmask 162944   ;;  %vm546_vm14 = vcmask 195744  }
  0x12   : > { %v986_v2 = vunpack.c.l.bf16 %v238_v1  ;;  %vm597_vm15 = vcmask 228544  }
  0x17   : > { %784 = vset.pattern.permute.xlu0 %v846_v5  ;;  %786 = vset.pattern.permute.xlu1 %v847_v6 }
  0x18   : > { %399 = vperm.xlu0 %784, %v345_v4   ;;  %297 = vperm.xlu1 %786, %v345_v4  }
  0x19   : > { %788 = vset.pattern.permute.xlu2 %v848_v7 }
  0x1a   : > { %603 = vperm.xlu2 %788, %v345_v4  }
  0x20   : > { %789 = vset.pattern.permute.xlu1 %v849_v8  ;;  %368 = vrot.lane.b32.xlu0 %v906_v0, %s850_s26 }
  0x21   : > { %450 = vperm.xlu1 %789, %v345_v4   ;;  %791 = vset.pattern.permute.xlu0 %v848_v7 }
  0x22   : > { %790 = vset.pattern.permute.xlu2 %v851_v9 }
  0x23   : > { %501 = vperm.xlu2 %790, %v345_v4  }
  0x6a   : > { %v553_v21 = vpop.permute.xlu2 %552 }
  0x6b   : > { %v556_v30 = vadd.f32 %v796_v25, %v553_v21 }
  0x6d   : > { %v558_v35 = vmul.f32 0.2, %v556_v30  ;;  %vm557_vm5 = vcmp.gt.f32.partialorder %v556_v30, 0.0 }
  0x6f   : > { %v952_v40 = vsel %vm557_vm5, %v556_v30, %v558_v35 }
  0x70   : > { %v560_v42 = vsel %vm254_vm0, %v952_v40, -inf }
  0x74   : > { %v604_v39 = vpop.permute.xlu2 %603 }
  0x75   : > { %v607_v41 = vadd.f32 %v797_v36, %v604_v39 }
  0x77   : > { %v609_v43 = vmul.f32 0.2, %v607_v41  ;;  %vm608_vm6 = vcmp.gt.f32.partialorder %v607_v41, 0.0 }
  0x79   : > { %v959_v46 = vsel %vm608_vm6, %v607_v41, %v609_v43 }
  0x7a   : > { %v611_v48 = vsel %vm254_vm0, %v959_v46, -inf }
  0x7d   : > { %v502_v54 = vpop.permute.xlu2 %501 }
  0x7e   : > { %v505_v55 = vadd.f32 %v799_v53, %v502_v54 }
  0x80   : > { %v507_v56 = vmul.f32 0.2, %v505_v55  ;;  %vm506_vm8 = vcmp.gt.f32.partialorder %v505_v55, 0.0 }
  0x81   : > { %v349_v12 = vpop.permute.xlu0 %348  ;;  %v247_v13 = vpop.permute.xlu1 %246 }
  0x82   : > { %v352_v14 = vadd.f32 %v792_v10, %v349_v12  ;;  %v250_v15 = vadd.f32 %v793_v11, %v247_v13  ;;  %v976_v57 = vsel %vm506_vm8, %v505_v55, %v507_v56 }
  0x83   : > { %v509_v58 = vsel %vm254_vm0, %v976_v57, -inf }
  0x84   : > { %v354_v16 = vmul.f32 0.2, %v352_v14  ;;  %v252_v17 = vmul.f32 0.2, %v250_v15  ;;  %vm353_vm1 = vcmp.gt.f32.partialorder %v352_v14, 0.0  ;;  %vm251_vm2 = vcmp.gt.f32.partialorder %v250_v15, 0.0 }
  0x86   : > { %v924_v18 = vsel %vm353_vm1, %v352_v14, %v354_v16  ;;  %v926_v19 = vsel %vm251_vm2, %v250_v15, %v252_v17  ;;  %vm662_vm1 = vcmask 261120  }
  0x87   : > { %v356_v22 = vsel %vm254_vm0, %v924_v18, -inf  ;;  %v255_v23 = vsel %vm254_vm0, %v926_v19, -inf }
  0x88   : > { %357 = vmax.xlane.f32.xlu0 %v356_v22  ;;  %256 = vmax.xlane.f32.xlu2 %v255_v23 }
  0x8a   : > { %v400_v26 = vpop.permute.xlu0 %399  ;;  %v298_v27 = vpop.permute.xlu1 %297 }
  0x8b   : > { %v403_v28 = vadd.f32 %v794_v20, %v400_v26  ;;  %v301_v29 = vadd.f32 %v795_v24, %v298_v27 }
  0x8d   : > { %v405_v31 = vmul.f32 0.2, %v403_v28  ;;  %v303_v32 = vmul.f32 0.2, %v301_v29  ;;  %vm404_vm3 = vcmp.gt.f32.partialorder %v403_v28, 0.0  ;;  %vm302_vm4 = vcmp.gt.f32.partialorder %v301_v29, 0.0 }
  0x8f   : > { %v941_v33 = vsel %vm404_vm3, %v403_v28, %v405_v31  ;;  %v943_v34 = vsel %vm302_vm4, %v301_v29, %v303_v32 }
  0x90   : > { %v407_v37 = vsel %vm254_vm0, %v941_v33, -inf  ;;  %v305_v38 = vsel %vm254_vm0, %v943_v34, -inf }
  0x91   : > { %408 = vmax.xlane.f32.xlu1 %v407_v37  ;;  %306 = vmax.xlane.f32.xlu2 %v305_v38 }
  0x92   : > { %v369_v52 = vpop.permute.xlu0 %368 }
  0x93   : > { %v451_v45 = vpop.permute.xlu1 %450  ;;  %381 = vmatpush.bf16.msra.mxu2 %v369_v52 }
  0x94   : > { %v454_v47 = vadd.f32 %v798_v44, %v451_v45 }
  0x96   : > { %v456_v49 = vmul.f32 0.2, %v454_v47  ;;  %vm455_vm7 = vcmp.gt.f32.partialorder %v454_v47, 0.0 }
  0x98   : > { %v964_v50 = vsel %vm455_vm7, %v454_v47, %v456_v49 }
  0x99   : > { %561 = vmax.xlane.f32.xlu2 %v560_v42  ;;  %v458_v51 = vsel %vm254_vm0, %v964_v50, -inf }
  0x9c   : > { %317 = vrot.lane.b32.xlu0 %v906_v0, %s852_s16 }
  0xa1   : > { %612 = vmax.xlane.f32.xlu2 %v611_v48 }
  0xa4   : > { %572 = vrot.lane.b32.xlu0 %v906_v0, %s853_s17  ;;  %s236_s17 = scalar_lea.vmem %s1034_s5, %s735_s22 }
  0xa9   : > { %459 = vmax.xlane.f32.xlu2 %v458_v51 }
  0xaa   : > { %419 = vrot.lane.b32.xlu1 %v906_v0, %s854_s20 }
  0xac   : > { %470 = vrot.lane.b32.xlu0 %v906_v0, %s855_s21 }
  0xb4   : > { %521 = vrot.lane.b32.xlu0 %v906_v0, %s856_s23 }
  0xc1   : > { %623 = vrot.lane.b32.xlu2 %v906_v0, %s857_s24 }
  0xd4   : > { %510 = vmax.xlane.f32.xlu1 %v509_v58 }
  0xfb   : > { %v358_v59 = vpop.xlane.xlu0 %357  ;;  %v257_v60 = vpop.xlane.xlu2 %256 }
  0xfc   : > { %v359_v61 = vsub.f32 %v924_v18, %v358_v59  ;;  %v258_v62 = vsub.f32 %v926_v19, %v257_v60 }
  0xfe   : > { %v360_v63 = vmul.f32 1.442695, %v359_v61  ;;  %v259_v0 = vmul.f32 1.442695, %v258_v62 }
 0x100   : > { %801 = vpow2.f32 %v360_v63 }
 0x101   : > { %803 = vpow2.f32 %v259_v0 }
 0x104   : > { %v307_v3 = vpop.xlane.xlu2 %306  ;;  %v409_v4 = vpop.xlane.xlu1 %408 }
 0x105   : > { %v308_v5 = vsub.f32 %v943_v34, %v307_v3  ;;  %v410_v6 = vsub.f32 %v941_v33, %v409_v4 }
 0x106   : > { %v802_v7 = vpop.eup %801 }
 0x107   : > { %v804_v8 = vpop.eup %803  ;;  %v309_v9 = vmul.f32 1.442695, %v308_v5  ;;  %v411_v10 = vmul.f32 1.442695, %v410_v6  ;;  %v362_v11 = vmul.f32 %v802_v7, %v986_v2 }
 0x108   : > { %v261_v12 = vmul.f32 %v804_v8, %v986_v2 }
 0x109   : > { %805 = vpow2.f32 %v309_v9  ;;  %v363_v13 = vsel %vm254_vm0, %v362_v11, 0.0  ;;  %v367_v14 = vpack.c.bf16 %v362_v11, %v362_v11 }
 0x10a   : > { %807 = vpow2.f32 %v411_v10  ;;  %364 = vadd.xlane.f32.xlu1 %v363_v13  ;;  %v262_v15 = vsel %vm254_vm0, %v261_v12, 0.0  ;;  %v266_v16 = vpack.c.bf16 %v261_v12, %v261_v12 }
 0x10b   : > { %263 = vadd.xlane.f32.xlu0 %v262_v15  ;;  %743 = vmatmul.msk.bf16.vlgmr.msra.gmra.mxu2 %vm254_vm0, %v367_v14 }
 0x10c   : > { %741 = vmatmul.msk.bf16.vlgmr.msra.gmra.mxu0 %vm254_vm0, %v266_v16  ;;  %v562_v17 = vpop.xlane.xlu2 %561 }
 0x10d   : > { %v563_v18 = vsub.f32 %v952_v40, %v562_v17 }
 0x10e   : > { %v318_v19 = vpop.permute.xlu0 %317 }
 0x10f   : > { %v806_v20 = vpop.eup %805  ;;  %v564_v21 = vmul.f32 1.442695, %v563_v18  ;;  %330 = vmatpush.bf16.msra.mxu1 %v318_v19 }
 0x110   : > { %v808_v22 = vpop.eup %807  ;;  %v311_v23 = vmul.f32 %v806_v20, %v986_v2 }
 0x111   : > { %809 = vpow2.f32 %v564_v21  ;;  %v413_v24 = vmul.f32 %v808_v22, %v986_v2 }
 0x112   : > { %v312_v25 = vsel %vm254_vm0, %v311_v23, 0.0  ;;  %v316_v26 = vpack.c.bf16 %v311_v23, %v311_v23 }
 0x113   : > { %v414_v27 = vsel %vm254_vm0, %v413_v24, 0.0  ;;  %313 = vadd.xlane.f32.xlu2 %v312_v25  ;;  %v418_v39 = vpack.c.bf16 %v413_v24, %v413_v24 }
 0x114   : > { %415 = vadd.xlane.f32.xlu1 %v414_v27  ;;  %v613_v28 = vpop.xlane.xlu2 %612  ;;  %742 = vmatmul.msk.bf16.vlgmr.msra.gmra.mxu1 %vm254_vm0, %v316_v26 }
 0x115   : > { %v614_v29 = vsub.f32 %v959_v46, %v613_v28 }
 0x116   : > { %v573_v30 = vpop.permute.xlu0 %572 }
 0x117   : > { %v810_v31 = vpop.eup %809  ;;  %v615_v32 = vmul.f32 1.442695, %v614_v29  ;;  %585 = vmatpush.bf16.msrb.mxu2 %v573_v30 }
 0x118   : > { %v566_v33 = vmul.f32 %v810_v31, %v986_v2 }
 0x119   : > { %811 = vpow2.f32 %v615_v32 }
 0x11a   : > { %v567_v34 = vsel %vm254_vm0, %v566_v33, 0.0  ;;  %v571_v35 = vpack.c.bf16 %v566_v33, %v566_v33 }
 0x11b   : > { %568 = vadd.xlane.f32.xlu0 %v567_v34 }
 0x11c   : > { %v460_v36 = vpop.xlane.xlu2 %459  ;;  %v420_v37 = vpop.permute.xlu1 %419  ;;  %747 = vmatmul.msk.bf16.vlgmr.msrb.gmra.mxu2 %vm254_vm0, %v571_v35 }
 0x11d   : > { %v461_v38 = vsub.f32 %v964_v50, %v460_v36  ;;  %432 = vmatpush.bf16.msra.mxu3 %v420_v37 }
 0x11e   : > { %v471_v40 = vpop.permute.xlu0 %470 }
 0x11f   : > { %v812_v41 = vpop.eup %811  ;;  %v462_v42 = vmul.f32 1.442695, %v461_v38  ;;  %483 = vmatpush.bf16.msrb.mxu0 %v471_v40 }
 0x120   : > { %744 = vmatmul.msk.bf16.vlgmr.msra.gmra.mxu3 %vm254_vm0, %v418_v39  ;;  %v617_v43 = vmul.f32 %v812_v41, %v986_v2 }
 0x121   : > { %813 = vpow2.f32 %v462_v42 }
 0x122   : > { %v618_v44 = vsel %vm254_vm0, %v617_v43, 0.0  ;;  %v622_v51 = vpack.c.bf16 %v617_v43, %v617_v43 }
 0x123   : > { %619 = vadd.xlane.f32.xlu2 %v618_v44 }
 0x124   : > { %v624_v45 = vpop.permute.xlu2 %623 }
 0x125   : > { %636 = vmatpush.bf16.msrb.mxu3 %v624_v45 }
 0x126   : > { %v522_v46 = vpop.permute.xlu0 %521 }
 0x127   : > { %v814_v47 = vpop.eup %813  ;;  %534 = vmatpush.bf16.msrb.mxu1 %v522_v46 }
 0x128   : > { %v464_v48 = vmul.f32 %v814_v47, %v986_v2 }
 0x12a   : > { %v465_v49 = vsel %vm254_vm0, %v464_v48, 0.0  ;;  %v469_v50 = vpack.c.bf16 %v464_v48, %v464_v48 }
 0x12b   : > { %466 = vadd.xlane.f32.xlu1 %v465_v49 }
 0x12c   : > { %745 = vmatmul.msk.bf16.vlgmr.msrb.gmra.mxu0 %vm254_vm0, %v469_v50  ;;  %v800_v50 = vld [vmem:[%s1033_s4] ss:$0 sm:$0xff] }
 0x130   : > { %748 = vmatmul.msk.bf16.vlgmr.msrb.gmra.mxu3 %vm254_vm0, %v622_v51 }
 0x147   : > { %v511_v52 = vpop.xlane.xlu1 %510 }
 0x148   : > { %v512_v53 = vsub.f32 %v976_v57, %v511_v52 }
 0x14a   : > { %v513_v54 = vmul.f32 1.442695, %v512_v53 }
 0x14c   : > { %815 = vpow2.f32 %v513_v54 }
 0x152   : > { %v816_v55 = vpop.eup %815 }
 0x153   : > { %v515_v56 = vmul.f32 %v816_v55, %v986_v2 }
 0x155   : > { %v516_v58 = vsel %vm254_vm0, %v515_v56, 0.0  ;;  %v520_v59 = vpack.c.bf16 %v515_v56, %v515_v56 }
 0x156   : > { %517 = vadd.xlane.f32.xlu1 %v516_v58 }
 0x157   : > { %746 = vmatmul.msk.bf16.vlgmr.msrb.gmra.mxu1 %vm254_vm0, %v520_v59  ;;  %vm648_vm0 = vcmask 261344  }
 0x17d   : > { %v365_v62 = vpop.xlane.xlu1 %364 }
 0x17e   : > { %v264_v60 = vpop.xlane.xlu0 %263  ;;  %v366_v63 = vmax.f32 %v365_v62, 1e-20 }
 0x17f   : > { %v265_v61 = vmax.f32 %v264_v60, 1e-20 }
 0x181   : > { %817 = vrcp.f32 %v265_v61 }
 0x182   : > { %819 = vrcp.f32 %v366_v63 }
 0x186   : > { %v314_v0 = vpop.xlane.xlu2 %313 }
 0x187   : > { %v315_v1 = vmax.f32 %v314_v0, 1e-20  ;;  %v818_v57 = vpop.eup %817  ;;  %v416_v11 = vpop.xlane.xlu1 %415 }
 0x188   : > { %v820_v2 = vpop.eup %819  ;;  %v417_v13 = vmax.f32 %v416_v11, 1e-20 }
 0x189   : > { %v285_v3 = vpop.f32.mrf.mxu0  ;;  %821 = vrcp.f32 %v315_v1 }
 0x18a   : > { %v290_v4 = vmul.f32 %v818_v57, %v285_v3  ;;  %823 = vrcp.f32 %v417_v13 }
 0x18c   : > { %292 = vst.msk [vmem:[#allocation2] sm:$0xff] %vm291_vm9, %v290_v4 }
 0x18e   : > { %v383_v5 = vpop.f32.mrf.mxu2  ;;  %v569_v15 = vpop.xlane.xlu0 %568 }
 0x18f   : > { %v388_v6 = vmul.f32 %v820_v2, %v383_v5  ;;  %v822_v7 = vpop.eup %821  ;;  %v570_v19 = vmax.f32 %v569_v15, 1e-20 }
 0x190   : > { %v824_v20 = vpop.eup %823 }
 0x191   : > { %v287_v8 = vpop.f32.mrf.mxu0  ;;  %v332_v9 = vpop.f32.mrf.mxu1  ;;  %390 = vrot.lane.b32.xlu0 %v388_v6, %s858_s6 }
 0x192   : > { %v337_v10 = vmul.f32 %v822_v7, %v332_v9 }
 0x194   : > { %339 = vrot.lane.b32.xlu1 %v337_v10, %s859_s7 }
 0x196   : > { %v385_v12 = vpop.f32.mrf.mxu2  ;;  %v620_v23 = vpop.xlane.xlu2 %619 }
 0x197   : > { %v621_v26 = vmax.f32 %v620_v23, 1e-20 }
 0x199   : > { %v334_v14 = vpop.f32.mrf.mxu1 }
 0x19e   : > { %v467_v16 = vpop.xlane.xlu1 %466 }
 0x19f   : > { %v468_v17 = vmax.f32 %v467_v16, 1e-20  ;;  %v587_v18 = vpop.f32.mrf.mxu2 }
 0x1a1   : > { %825 = vrcp.f32 %v468_v17 }
 0x1a2   : > { %827 = vrcp.f32 %v570_v19 }
 0x1a3   : > { %v434_v21 = vpop.f32.mrf.mxu3  ;;  %829 = vrcp.f32 %v621_v26 }
 0x1a4   : > { %v439_v22 = vmul.f32 %v824_v20, %v434_v21 }
 0x1a6   : > { %441 = vrot.lane.b32.xlu2 %v439_v22, %s860_s8 }
 0x1a7   : > { %v589_v24 = vpop.f32.mrf.mxu2  ;;  %v826_v25 = vpop.eup %825 }
 0x1a8   : > { %v828_v29 = vpop.eup %827 }
 0x1a9   : > { %v485_v27 = vpop.f32.mrf.mxu0  ;;  %v592_v31 = vmul.f32 %v828_v29, %v587_v18  ;;  %v830_v33 = vpop.eup %829 }
 0x1aa   : > { %v490_v28 = vmul.f32 %v826_v25, %v485_v27 }
 0x1ab   : > { %v436_v30 = vpop.f32.mrf.mxu3 }
 0x1ac   : > { %492 = vrot.lane.b32.xlu0 %v490_v28, %s861_s9 }
 0x1ae   : > { %594 = vrot.lane.b32.xlu2 %v592_v31, %s862_s10 }
 0x1b1   : > { %v487_v32 = vpop.f32.mrf.mxu0 }
 0x1b3   : > { %v638_v34 = vpop.f32.mrf.mxu3 }
 0x1b4   : > { %v643_v35 = vmul.f32 %v830_v33, %v638_v34 }
 0x1b6   : > { %645 = vrot.lane.b32.xlu0 %v643_v35, %s863_s11 }
 0x1bb   : > { %v640_v36 = vpop.f32.mrf.mxu3 }
 0x1c9   : > { %v518_v37 = vpop.xlane.xlu1 %517 }
 0x1ca   : > { %v519_v38 = vmax.f32 %v518_v37, 1e-20 }
 0x1cc   : > { %831 = vrcp.f32 %v519_v38 }
 0x1d2   : > { %v832_v39 = vpop.eup %831 }
 0x1d4   : > { %v536_v40 = vpop.f32.mrf.mxu1 }
 0x1d5   : > { %v541_v41 = vmul.f32 %v832_v39, %v536_v40 }
 0x1d7   : > { %543 = vrot.lane.b32.xlu1 %v541_v41, %s864_s12 }
 0x1dc   : > { %v538_v42 = vpop.f32.mrf.mxu1 }
 0x200   : > { %v442_v45 = vpop.permute.xlu2 %441 }
 0x203   : > { %v391_v44 = vpop.permute.xlu0 %390 }
 0x206   : > { %v340_v43 = vpop.permute.xlu1 %339 }
 0x207   : > { %343 = vst.msk [vmem:[#allocation2] sm:$0xff] %vm342_vm10, %v340_v43 }
 0x208   : > { %394 = vst.msk [vmem:[#allocation2] sm:$0xff] %vm393_vm11, %v391_v44  ;;  %v595_v48 = vpop.permute.xlu2 %594 }
 0x209   : > { %445 = vst.msk [vmem:[#allocation2] sm:$0xff] %vm444_vm12, %v442_v45 }
 0x21e   : > { %v493_v46 = vpop.permute.xlu0 %492 }
 0x21f   : > { %496 = vst.msk [vmem:[#allocation2] sm:$0xff] %vm495_vm13, %v493_v46 }
 0x228   : > { %v646_v49 = vpop.permute.xlu0 %645 }
 0x249   : > { %v544_v47 = vpop.permute.xlu1 %543 }
 0x24a   : > { %547 = vst.msk [vmem:[#allocation2] sm:$0xff] %vm546_vm14, %v544_v47 }
 0x24b   : > { %598 = vst.msk [vmem:[#allocation2] sm:$0xff] %vm597_vm15, %v595_v48 }
 0x24c   : > { %649 = vst.msk [vmem:[#allocation2] sm:$0xff] %vm648_vm0, %v646_v49 }
 0x253   : > { %v650_v51 = vld [vmem:[#allocation2] sm:$0xff] }
 0x254   : > { %v655_v52 = vadd.f32 %v800_v50, %v650_v51 }
 0x256   : > { %v657_v53 = vmin.f32 %v655_v52, 0.0  ;;  %vm656_vm2 = vcmp.gt.f32.partialorder %v655_v52, 0.0 }
 0x258   : > { %v658_v54 = vmul.f32 1.442695, %v657_v53 }
 0x25a   : > { %833 = vpow2.f32 %v658_v54 }
 0x260   : > { %v834_v55 = vpop.eup %833 }
 0x261   : > { %v749_v56 = vadd.f32 -1.0, %v834_v55 }
 0x263   : > { %v661_v58 = vsel %vm656_vm2, %v655_v52, %v749_v56 }
 0x264   : > { %663 = vst.msk [vmem:[%s236_s17] sm:$0xff] %vm662_vm1, %v661_v58 }
 0x265 PF: > { %s15_s18 = sadd.s32 1, %s841_s18  }
 0x266   : > { %p12_p4 = scmp.ge.s32.totalorder %s15_s18, 4  }
 0x268   :  { %14 = sbr.rel (!%p12_p4) target bundleno = 1 (0x1), region = 73 }

</bundles_post_ra>
